<compile_context>
chip_gen: v6e
topology: v6e:2x2x1
jax: 0.10.0
libtpu: 0.0.40
codegen_flags: <defaults>
</compile_context>

<pallas_src>
import jax
import jax.numpy as jnp
from jax.experimental import pallas as pl
from jax.experimental.pallas import tpu as pltpu

L = 71          # sequence length (required by nn.Linear(71, out_dim))
C_IN = 3
C_MID = 16
OUT_DIM = 34
PAD_OUT = 128   # head width padded to a full lane tile (zeros beyond OUT_DIM)
BN_EPS = 1e-5
LN_EPS = 1e-5
NEG_SLOPE = 0.3


def _leaky(v):
    return jnp.where(v >= 0, v, NEG_SLOPE * v)


def beat_encoder_kernel(
    x_ref,                                   # (3, B*L)   input, channel-first, batch on lanes
    mstart_ref,                              # (1, B*L)   0.0 where per-batch l == 0, else 1.0
    mend_ref,                                # (1, B*L)   0.0 where per-batch l == L-1, else 1.0
    w1_ref, b1_ref, g1_ref, be1_ref,         # conv1: (16, 3*3), (16,1), (16,1), (16,1)
    w2_ref, b2_ref, g2_ref, be2_ref,         # conv2: (16, 3*16), ...
    w3_ref, b3_ref,                          # conv3
    A1_ref, c1_ref, lg1_ref, lb1_ref,        # linear1: (71,128), (1,128), (1,128), (1,128)
    A2_ref, c2_ref, lg2_ref, lb2_ref,        # linear2: (128,128), ...
    A3_ref, c3_ref,                          # linear3
    out_ref,                                 # (B*16, 128)
):
    nbl = x_ref.shape[1]                     # B * L (static)
    batch = nbl // L
    inv_n = 1.0 / nbl
    mstart = mstart_ref[...]
    mend = mend_ref[...]

    def conv(h, w_ref, b_ref):
        # 3-tap Conv1d(padding=1) as ONE matmul: stack the shifted tap views along rows.
        # Per-batch boundary masks keep the shift from bleeding across batch segments.
        z = jnp.zeros((h.shape[0], 1), dtype=h.dtype)
        h_m = jnp.concatenate([z, h[:, :-1]], axis=1) * mstart   # x[l-1], zero at l == 0
        h_p = jnp.concatenate([h[:, 1:], z], axis=1) * mend      # x[l+1], zero at l == L-1
        xs = jnp.concatenate([h_m, h, h_p], axis=0)              # (3*Cin, B*L)
        return jnp.dot(w_ref[...], xs, preferred_element_type=jnp.float32) + b_ref[...]

    def bn_lrelu(h, g_ref, be_ref):
        # training-mode BatchNorm1d: biased stats over (batch, length) per channel,
        # affine folded into a single per-channel scale/shift.
        mean = jnp.sum(h, axis=1, keepdims=True) * inv_n         # (C, 1)
        msq = jnp.sum(h * h, axis=1, keepdims=True) * inv_n
        var = msq - mean * mean
        s = g_ref[...] * jax.lax.rsqrt(var + BN_EPS)
        t = be_ref[...] - mean * s
        return _leaky(h * s + t)

    def ln_lrelu(z, g_ref, b_ref):
        # LayerNorm over the first OUT_DIM lanes; lanes >= OUT_DIM are zero (padded
        # weights/gamma/beta) so they stay exactly zero through the whole head.
        mean = jnp.sum(z, axis=1, keepdims=True) * (1.0 / OUT_DIM)
        msq = jnp.sum(z * z, axis=1, keepdims=True) * (1.0 / OUT_DIM)
        var = msq - mean * mean
        zn = (z - mean) * jax.lax.rsqrt(var + LN_EPS) * g_ref[...] + b_ref[...]
        return _leaky(zn)

    # ---- conv stack: one fused-tap matmul per layer, batch folded into lanes ----
    h = bn_lrelu(conv(x_ref[...], w1_ref, b1_ref), g1_ref, be1_ref)
    h = bn_lrelu(conv(h, w2_ref, b2_ref), g2_ref, be2_ref)
    h = conv(h, w3_ref, b3_ref)                                  # (16, B*L)

    # ---- regroup (16, B*L) -> (B*16, L): B static lane slices + one sublane concat ----
    rows = jnp.concatenate([h[:, b * L:(b + 1) * L] for b in range(batch)], axis=0)

    # ---- linear head: 3 matmuls over all (batch, channel) rows at once, lane-dense ----
    z = jnp.dot(rows, A1_ref[...], preferred_element_type=jnp.float32) + c1_ref[...]
    z = ln_lrelu(z, lg1_ref, lb1_ref)
    z = jnp.dot(z, A2_ref[...], preferred_element_type=jnp.float32) + c2_ref[...]
    z = ln_lrelu(z, lg2_ref, lb2_ref)
    z = jnp.dot(z, A3_ref[...], preferred_element_type=jnp.float32) + c3_ref[...]
    out_ref[...] = z                                             # single unmasked 128-wide store


def make_params(key):
    keys = iter(jax.random.split(key, 24))

    def rnd(shape, scale):
        return jax.random.normal(next(keys), shape, jnp.float32) * scale

    def conv_w(cout, cin):
        # PyTorch layout (Cout, Cin, K) -> fused-tap layout (Cout, K*Cin),
        # column index = k*Cin + c  (matches the [x[l-1]; x[l]; x[l+1]] row stacking).
        w_pt = rnd((cout, cin, 3), 0.2)
        return jnp.transpose(w_pt, (0, 2, 1)).reshape(cout, 3 * cin)

    def pad_cols(a, width=PAD_OUT):
        return jnp.pad(a, ((0, 0), (0, width - a.shape[1])))

    w1 = conv_w(C_MID, C_IN)
    b1 = rnd((C_MID, 1), 0.1)
    g1 = jnp.ones((C_MID, 1), jnp.float32)
    be1 = jnp.zeros((C_MID, 1), jnp.float32)
    w2 = conv_w(C_MID, C_MID)
    b2 = rnd((C_MID, 1), 0.1)
    g2 = jnp.ones((C_MID, 1), jnp.float32)
    be2 = jnp.zeros((C_MID, 1), jnp.float32)
    w3 = conv_w(C_MID, C_MID)
    b3 = rnd((C_MID, 1), 0.1)

    # Linear weights: PyTorch (out, in) -> (in, out), zero-padded to 128 output lanes
    # (and 128 input rows for the 34->34 layers) so the head stays lane-dense.
    A1 = pad_cols(rnd((OUT_DIM, L), 0.1).T)                                    # (71, 128)
    c1 = pad_cols(rnd((1, OUT_DIM), 0.1))
    lg1 = pad_cols(jnp.ones((1, OUT_DIM), jnp.float32))
    lb1 = jnp.zeros((1, PAD_OUT), jnp.float32)
    A2 = jnp.pad(rnd((OUT_DIM, OUT_DIM), 0.1).T,
                 ((0, PAD_OUT - OUT_DIM), (0, PAD_OUT - OUT_DIM)))             # (128, 128)
    c2 = pad_cols(rnd((1, OUT_DIM), 0.1))
    lg2 = pad_cols(jnp.ones((1, OUT_DIM), jnp.float32))
    lb2 = jnp.zeros((1, PAD_OUT), jnp.float32)
    A3 = jnp.pad(rnd((OUT_DIM, OUT_DIM), 0.1).T,
                 ((0, PAD_OUT - OUT_DIM), (0, PAD_OUT - OUT_DIM)))             # (128, 128)
    c3 = pad_cols(rnd((1, OUT_DIM), 0.1))
    return [w1, b1, g1, be1, w2, b2, g2, be2, w3, b3,
            A1, c1, lg1, lb1, A2, c2, lg2, lb2, A3, c3]


def beat_encoder(wav_data, params):
    # wav_data: (B, 71, 3) float32, exactly as the PyTorch module's input.
    B = wav_data.shape[0]
    # (B, 71, 3) -> (3, B, 71) -> (3, B*71): channel-first, batch folded into the lane axis.
    x_flat = jnp.transpose(wav_data, (2, 0, 1)).reshape(C_IN, B * L)

    # Per-batch boundary masks for the fused conv taps (1.0 keep / 0.0 zero-pad position).
    pos = jnp.arange(B * L) % L
    mstart = (pos != 0).astype(jnp.float32).reshape(1, B * L)
    mend = (pos != L - 1).astype(jnp.float32).reshape(1, B * L)

    args = [x_flat, mstart, mend] + list(params)
    vmem = pl.BlockSpec(memory_space=pltpu.MemorySpace.VMEM)
    out = pl.pallas_call(
        beat_encoder_kernel,
        out_shape=jax.ShapeDtypeStruct((B * C_MID, PAD_OUT), jnp.float32),
        in_specs=[vmem] * len(args),
        out_specs=vmem,
    )(*args)
    # rows are ordered (b*16 + c); PyTorch returns out.transpose(1, 2) -> (B, out_dim, 16)
    out = out[:, :OUT_DIM].reshape(B, C_MID, OUT_DIM)
    return jnp.transpose(out, (0, 2, 1))


if __name__ == "__main__":
    B = 2
    x = jax.random.normal(jax.random.PRNGKey(0), (B, L, C_IN), jnp.float32)
    params = make_params(jax.random.PRNGKey(42))
    out = beat_encoder(x, params)
    out = jax.block_until_ready(out)
    assert out.shape == (B, OUT_DIM, C_MID) and out.dtype == jnp.float32
    assert bool(jnp.all(jnp.isfinite(out)))
    print("KERNEL_OK")
</pallas_src>

<mosaic_0001>
module attributes {stable_mosaic.version = 11 : i64} {
  func.func @beat_encoder_kernel(%arg0: memref<3x142xf32, #tpu.memory_space<vmem>>, %arg1: memref<1x142xf32, #tpu.memory_space<vmem>>, %arg2: memref<1x142xf32, #tpu.memory_space<vmem>>, %arg3: memref<16x9xf32, #tpu.memory_space<vmem>>, %arg4: memref<16x1xf32, #tpu.memory_space<vmem>>, %arg5: memref<16x1xf32, #tpu.memory_space<vmem>>, %arg6: memref<16x1xf32, #tpu.memory_space<vmem>>, %arg7: memref<16x48xf32, #tpu.memory_space<vmem>>, %arg8: memref<16x1xf32, #tpu.memory_space<vmem>>, %arg9: memref<16x1xf32, #tpu.memory_space<vmem>>, %arg10: memref<16x1xf32, #tpu.memory_space<vmem>>, %arg11: memref<16x48xf32, #tpu.memory_space<vmem>>, %arg12: memref<16x1xf32, #tpu.memory_space<vmem>>, %arg13: memref<71x128xf32, #tpu.memory_space<vmem>>, %arg14: memref<1x128xf32, #tpu.memory_space<vmem>>, %arg15: memref<1x128xf32, #tpu.memory_space<vmem>>, %arg16: memref<1x128xf32, #tpu.memory_space<vmem>>, %arg17: memref<128x128xf32, #tpu.memory_space<vmem>>, %arg18: memref<1x128xf32, #tpu.memory_space<vmem>>, %arg19: memref<1x128xf32, #tpu.memory_space<vmem>>, %arg20: memref<1x128xf32, #tpu.memory_space<vmem>>, %arg21: memref<128x128xf32, #tpu.memory_space<vmem>>, %arg22: memref<1x128xf32, #tpu.memory_space<vmem>>, %arg23: memref<32x128xf32, #tpu.memory_space<vmem>>) attributes {dimension_semantics = [], scalar_prefetch = 0 : i64, scratch_operands = 0 : i64, tpu.core_type = #tpu.core_type<tc>} {
    %c0 = arith.constant 0 : index
    %c0_0 = arith.constant 0 : index
    %0 = vector.load %arg1[%c0, %c0_0] : memref<1x142xf32, #tpu.memory_space<vmem>>, vector<1x142xf32>
    %c0_1 = arith.constant 0 : index
    %c0_2 = arith.constant 0 : index
    %1 = vector.load %arg2[%c0_1, %c0_2] : memref<1x142xf32, #tpu.memory_space<vmem>>, vector<1x142xf32>
    %c0_3 = arith.constant 0 : index
    %c0_4 = arith.constant 0 : index
    %2 = vector.load %arg0[%c0_3, %c0_4] : memref<3x142xf32, #tpu.memory_space<vmem>>, vector<3x142xf32>
    %cst = arith.constant 0.000000e+00 : f32
    %3 = vector.broadcast %cst : f32 to vector<3x1xf32>
    %4 = vector.extract_strided_slice %2 {offsets = [0, 0], sizes = [3, 141], strides = [1, 1]} : vector<3x142xf32> to vector<3x141xf32>
    %5 = tpu.concatenate %3, %4 in 1 : vector<3x1xf32>, vector<3x141xf32> -> vector<3x142xf32>
    %6 = vector.broadcast %0 : vector<1x142xf32> to vector<3x142xf32>
    %7 = arith.mulf %5, %6 : vector<3x142xf32>
    %8 = vector.extract_strided_slice %2 {offsets = [0, 1], sizes = [3, 141], strides = [1, 1]} : vector<3x142xf32> to vector<3x141xf32>
    %9 = tpu.concatenate %8, %3 in 1 : vector<3x141xf32>, vector<3x1xf32> -> vector<3x142xf32>
    %10 = vector.broadcast %1 : vector<1x142xf32> to vector<3x142xf32>
    %11 = arith.mulf %9, %10 : vector<3x142xf32>
    %12 = tpu.concatenate %7, %2, %11 in 0 : vector<3x142xf32>, vector<3x142xf32>, vector<3x142xf32> -> vector<9x142xf32>
    %c0_5 = arith.constant 0 : index
    %c0_6 = arith.constant 0 : index
    %13 = vector.load %arg3[%c0_5, %c0_6] : memref<16x9xf32, #tpu.memory_space<vmem>>, vector<16x9xf32>
    %cst_7 = arith.constant dense<0.000000e+00> : vector<16x142xf32>
    %14 = tpu.matmul %13, %12, %cst_7 {dimension_numbers = #tpu.dot_dimension_numbers<[1], [0], [0], [1], [0, 0, 1, 1], [], []>} : vector<16x9xf32>, vector<9x142xf32>, vector<16x142xf32> -> vector<16x142xf32>
    %c0_8 = arith.constant 0 : index
    %c0_9 = arith.constant 0 : index
    %15 = vector.load %arg4[%c0_8, %c0_9] : memref<16x1xf32, #tpu.memory_space<vmem>>, vector<16x1xf32>
    %16 = vector.broadcast %15 : vector<16x1xf32> to vector<16x142xf32>
    %17 = arith.addf %14, %16 : vector<16x142xf32>
    %cst_10 = arith.constant dense<0.000000e+00> : vector<16xf32>
    %18 = vector.multi_reduction <add>, %17, %cst_10 [1] : vector<16x142xf32> to vector<16xf32>
    %19 = vector.shape_cast %18 : vector<16xf32> to vector<16x1xf32>
    %cst_11 = arith.constant 0.00704225338 : f32
    %20 = vector.broadcast %cst_11 : f32 to vector<16x1xf32>
    %21 = arith.mulf %19, %20 : vector<16x1xf32>
    %22 = arith.mulf %17, %17 : vector<16x142xf32>
    %cst_12 = arith.constant dense<0.000000e+00> : vector<16xf32>
    %23 = vector.multi_reduction <add>, %22, %cst_12 [1] : vector<16x142xf32> to vector<16xf32>
    %24 = vector.shape_cast %23 : vector<16xf32> to vector<16x1xf32>
    %cst_13 = arith.constant 0.00704225338 : f32
    %25 = vector.broadcast %cst_13 : f32 to vector<16x1xf32>
    %26 = arith.mulf %24, %25 : vector<16x1xf32>
    %27 = arith.mulf %21, %21 : vector<16x1xf32>
    %28 = arith.subf %26, %27 : vector<16x1xf32>
    %c0_14 = arith.constant 0 : index
    %c0_15 = arith.constant 0 : index
    %29 = vector.load %arg5[%c0_14, %c0_15] : memref<16x1xf32, #tpu.memory_space<vmem>>, vector<16x1xf32>
    %cst_16 = arith.constant 9.99999974E-6 : f32
    %30 = vector.broadcast %cst_16 : f32 to vector<16x1xf32>
    %31 = arith.addf %28, %30 : vector<16x1xf32>
    %32 = math.rsqrt %31 : vector<16x1xf32>
    %33 = arith.mulf %29, %32 : vector<16x1xf32>
    %c0_17 = arith.constant 0 : index
    %c0_18 = arith.constant 0 : index
    %34 = vector.load %arg6[%c0_17, %c0_18] : memref<16x1xf32, #tpu.memory_space<vmem>>, vector<16x1xf32>
    %35 = arith.mulf %21, %33 : vector<16x1xf32>
    %36 = arith.subf %34, %35 : vector<16x1xf32>
    %37 = vector.broadcast %33 : vector<16x1xf32> to vector<16x142xf32>
    %38 = arith.mulf %17, %37 : vector<16x142xf32>
    %39 = vector.broadcast %36 : vector<16x1xf32> to vector<16x142xf32>
    %40 = arith.addf %38, %39 : vector<16x142xf32>
    %cst_19 = arith.constant 0.000000e+00 : f32
    %41 = vector.broadcast %cst_19 : f32 to vector<16x142xf32>
    %42 = arith.cmpf oge, %40, %41 : vector<16x142xf32>
    %cst_20 = arith.constant 3.000000e-01 : f32
    %43 = vector.broadcast %cst_20 : f32 to vector<16x142xf32>
    %44 = arith.mulf %43, %40 : vector<16x142xf32>
    %45 = arith.select %42, %40, %44 : vector<16x142xi1>, vector<16x142xf32>
    %cst_21 = arith.constant 0.000000e+00 : f32
    %46 = vector.broadcast %cst_21 : f32 to vector<16x1xf32>
    %47 = vector.extract_strided_slice %45 {offsets = [0, 0], sizes = [16, 141], strides = [1, 1]} : vector<16x142xf32> to vector<16x141xf32>
    %48 = tpu.concatenate %46, %47 in 1 : vector<16x1xf32>, vector<16x141xf32> -> vector<16x142xf32>
    %49 = vector.broadcast %0 : vector<1x142xf32> to vector<16x142xf32>
    %50 = arith.mulf %48, %49 : vector<16x142xf32>
    %51 = vector.extract_strided_slice %45 {offsets = [0, 1], sizes = [16, 141], strides = [1, 1]} : vector<16x142xf32> to vector<16x141xf32>
    %52 = tpu.concatenate %51, %46 in 1 : vector<16x141xf32>, vector<16x1xf32> -> vector<16x142xf32>
    %53 = vector.broadcast %1 : vector<1x142xf32> to vector<16x142xf32>
    %54 = arith.mulf %52, %53 : vector<16x142xf32>
    %55 = tpu.concatenate %50, %45, %54 in 0 : vector<16x142xf32>, vector<16x142xf32>, vector<16x142xf32> -> vector<48x142xf32>
    %c0_22 = arith.constant 0 : index
    %c0_23 = arith.constant 0 : index
    %56 = vector.load %arg7[%c0_22, %c0_23] : memref<16x48xf32, #tpu.memory_space<vmem>>, vector<16x48xf32>
    %cst_24 = arith.constant dense<0.000000e+00> : vector<16x142xf32>
    %57 = tpu.matmul %56, %55, %cst_24 {dimension_numbers = #tpu.dot_dimension_numbers<[1], [0], [0], [1], [0, 0, 1, 1], [], []>} : vector<16x48xf32>, vector<48x142xf32>, vector<16x142xf32> -> vector<16x142xf32>
    %c0_25 = arith.constant 0 : index
    %c0_26 = arith.constant 0 : index
    %58 = vector.load %arg8[%c0_25, %c0_26] : memref<16x1xf32, #tpu.memory_space<vmem>>, vector<16x1xf32>
    %59 = vector.broadcast %58 : vector<16x1xf32> to vector<16x142xf32>
    %60 = arith.addf %57, %59 : vector<16x142xf32>
    %cst_27 = arith.constant dense<0.000000e+00> : vector<16xf32>
    %61 = vector.multi_reduction <add>, %60, %cst_27 [1] : vector<16x142xf32> to vector<16xf32>
    %62 = vector.shape_cast %61 : vector<16xf32> to vector<16x1xf32>
    %cst_28 = arith.constant 0.00704225338 : f32
    %63 = vector.broadcast %cst_28 : f32 to vector<16x1xf32>
    %64 = arith.mulf %62, %63 : vector<16x1xf32>
    %65 = arith.mulf %60, %60 : vector<16x142xf32>
    %cst_29 = arith.constant dense<0.000000e+00> : vector<16xf32>
    %66 = vector.multi_reduction <add>, %65, %cst_29 [1] : vector<16x142xf32> to vector<16xf32>
    %67 = vector.shape_cast %66 : vector<16xf32> to vector<16x1xf32>
    %cst_30 = arith.constant 0.00704225338 : f32
    %68 = vector.broadcast %cst_30 : f32 to vector<16x1xf32>
    %69 = arith.mulf %67, %68 : vector<16x1xf32>
    %70 = arith.mulf %64, %64 : vector<16x1xf32>
    %71 = arith.subf %69, %70 : vector<16x1xf32>
    %c0_31 = arith.constant 0 : index
    %c0_32 = arith.constant 0 : index
    %72 = vector.load %arg9[%c0_31, %c0_32] : memref<16x1xf32, #tpu.memory_space<vmem>>, vector<16x1xf32>
    %cst_33 = arith.constant 9.99999974E-6 : f32
    %73 = vector.broadcast %cst_33 : f32 to vector<16x1xf32>
    %74 = arith.addf %71, %73 : vector<16x1xf32>
    %75 = math.rsqrt %74 : vector<16x1xf32>
    %76 = arith.mulf %72, %75 : vector<16x1xf32>
    %c0_34 = arith.constant 0 : index
    %c0_35 = arith.constant 0 : index
    %77 = vector.load %arg10[%c0_34, %c0_35] : memref<16x1xf32, #tpu.memory_space<vmem>>, vector<16x1xf32>
    %78 = arith.mulf %64, %76 : vector<16x1xf32>
    %79 = arith.subf %77, %78 : vector<16x1xf32>
    %80 = vector.broadcast %76 : vector<16x1xf32> to vector<16x142xf32>
    %81 = arith.mulf %60, %80 : vector<16x142xf32>
    %82 = vector.broadcast %79 : vector<16x1xf32> to vector<16x142xf32>
    %83 = arith.addf %81, %82 : vector<16x142xf32>
    %cst_36 = arith.constant 0.000000e+00 : f32
    %84 = vector.broadcast %cst_36 : f32 to vector<16x142xf32>
    %85 = arith.cmpf oge, %83, %84 : vector<16x142xf32>
    %cst_37 = arith.constant 3.000000e-01 : f32
    %86 = vector.broadcast %cst_37 : f32 to vector<16x142xf32>
    %87 = arith.mulf %86, %83 : vector<16x142xf32>
    %88 = arith.select %85, %83, %87 : vector<16x142xi1>, vector<16x142xf32>
    %cst_38 = arith.constant 0.000000e+00 : f32
    %89 = vector.broadcast %cst_38 : f32 to vector<16x1xf32>
    %90 = vector.extract_strided_slice %88 {offsets = [0, 0], sizes = [16, 141], strides = [1, 1]} : vector<16x142xf32> to vector<16x141xf32>
    %91 = tpu.concatenate %89, %90 in 1 : vector<16x1xf32>, vector<16x141xf32> -> vector<16x142xf32>
    %92 = vector.broadcast %0 : vector<1x142xf32> to vector<16x142xf32>
    %93 = arith.mulf %91, %92 : vector<16x142xf32>
    %94 = vector.extract_strided_slice %88 {offsets = [0, 1], sizes = [16, 141], strides = [1, 1]} : vector<16x142xf32> to vector<16x141xf32>
    %95 = tpu.concatenate %94, %89 in 1 : vector<16x141xf32>, vector<16x1xf32> -> vector<16x142xf32>
    %96 = vector.broadcast %1 : vector<1x142xf32> to vector<16x142xf32>
    %97 = arith.mulf %95, %96 : vector<16x142xf32>
    %98 = tpu.concatenate %93, %88, %97 in 0 : vector<16x142xf32>, vector<16x142xf32>, vector<16x142xf32> -> vector<48x142xf32>
    %c0_39 = arith.constant 0 : index
    %c0_40 = arith.constant 0 : index
    %99 = vector.load %arg11[%c0_39, %c0_40] : memref<16x48xf32, #tpu.memory_space<vmem>>, vector<16x48xf32>
    %cst_41 = arith.constant dense<0.000000e+00> : vector<16x142xf32>
    %100 = tpu.matmul %99, %98, %cst_41 {dimension_numbers = #tpu.dot_dimension_numbers<[1], [0], [0], [1], [0, 0, 1, 1], [], []>} : vector<16x48xf32>, vector<48x142xf32>, vector<16x142xf32> -> vector<16x142xf32>
    %c0_42 = arith.constant 0 : index
    %c0_43 = arith.constant 0 : index
    %101 = vector.load %arg12[%c0_42, %c0_43] : memref<16x1xf32, #tpu.memory_space<vmem>>, vector<16x1xf32>
    %102 = vector.broadcast %101 : vector<16x1xf32> to vector<16x142xf32>
    %103 = arith.addf %100, %102 : vector<16x142xf32>
    %104 = vector.extract_strided_slice %103 {offsets = [0, 0], sizes = [16, 71], strides = [1, 1]} : vector<16x142xf32> to vector<16x71xf32>
    %105 = vector.extract_strided_slice %103 {offsets = [0, 71], sizes = [16, 71], strides = [1, 1]} : vector<16x142xf32> to vector<16x71xf32>
    %106 = tpu.concatenate %104, %105 in 0 : vector<16x71xf32>, vector<16x71xf32> -> vector<32x71xf32>
    %c0_44 = arith.constant 0 : index
    %c0_45 = arith.constant 0 : index
    %107 = vector.load %arg13[%c0_44, %c0_45] : memref<71x128xf32, #tpu.memory_space<vmem>>, vector<71x128xf32>
    %cst_46 = arith.constant dense<0.000000e+00> : vector<32x128xf32>
    %108 = tpu.matmul %106, %107, %cst_46 {dimension_numbers = #tpu.dot_dimension_numbers<[1], [0], [0], [1], [0, 0, 1, 1], [], []>} : vector<32x71xf32>, vector<71x128xf32>, vector<32x128xf32> -> vector<32x128xf32>
    %c0_47 = arith.constant 0 : index
    %c0_48 = arith.constant 0 : index
    %109 = vector.load %arg14[%c0_47, %c0_48] : memref<1x128xf32, #tpu.memory_space<vmem>>, vector<1x128xf32>
    %110 = vector.broadcast %109 : vector<1x128xf32> to vector<32x128xf32>
    %111 = arith.addf %108, %110 : vector<32x128xf32>
    %cst_49 = arith.constant dense<0.000000e+00> : vector<32xf32>
    %112 = vector.multi_reduction <add>, %111, %cst_49 [1] : vector<32x128xf32> to vector<32xf32>
    %113 = vector.shape_cast %112 : vector<32xf32> to vector<32x1xf32>
    %cst_50 = arith.constant 0.0294117648 : f32
    %114 = vector.broadcast %cst_50 : f32 to vector<32x1xf32>
    %115 = arith.mulf %113, %114 : vector<32x1xf32>
    %116 = arith.mulf %111, %111 : vector<32x128xf32>
    %cst_51 = arith.constant dense<0.000000e+00> : vector<32xf32>
    %117 = vector.multi_reduction <add>, %116, %cst_51 [1] : vector<32x128xf32> to vector<32xf32>
    %118 = vector.shape_cast %117 : vector<32xf32> to vector<32x1xf32>
    %cst_52 = arith.constant 0.0294117648 : f32
    %119 = vector.broadcast %cst_52 : f32 to vector<32x1xf32>
    %120 = arith.mulf %118, %119 : vector<32x1xf32>
    %121 = arith.mulf %115, %115 : vector<32x1xf32>
    %122 = arith.subf %120, %121 : vector<32x1xf32>
    %123 = vector.broadcast %115 : vector<32x1xf32> to vector<32x128xf32>
    %124 = arith.subf %111, %123 : vector<32x128xf32>
    %cst_53 = arith.constant 9.99999974E-6 : f32
    %125 = vector.broadcast %cst_53 : f32 to vector<32x1xf32>
    %126 = arith.addf %122, %125 : vector<32x1xf32>
    %127 = math.rsqrt %126 : vector<32x1xf32>
    %128 = vector.broadcast %127 : vector<32x1xf32> to vector<32x128xf32>
    %129 = arith.mulf %124, %128 : vector<32x128xf32>
    %c0_54 = arith.constant 0 : index
    %c0_55 = arith.constant 0 : index
    %130 = vector.load %arg15[%c0_54, %c0_55] : memref<1x128xf32, #tpu.memory_space<vmem>>, vector<1x128xf32>
    %131 = vector.broadcast %130 : vector<1x128xf32> to vector<32x128xf32>
    %132 = arith.mulf %129, %131 : vector<32x128xf32>
    %c0_56 = arith.constant 0 : index
    %c0_57 = arith.constant 0 : index
    %133 = vector.load %arg16[%c0_56, %c0_57] : memref<1x128xf32, #tpu.memory_space<vmem>>, vector<1x128xf32>
    %134 = vector.broadcast %133 : vector<1x128xf32> to vector<32x128xf32>
    %135 = arith.addf %132, %134 : vector<32x128xf32>
    %cst_58 = arith.constant 0.000000e+00 : f32
    %136 = vector.broadcast %cst_58 : f32 to vector<32x128xf32>
    %137 = arith.cmpf oge, %135, %136 : vector<32x128xf32>
    %cst_59 = arith.constant 3.000000e-01 : f32
    %138 = vector.broadcast %cst_59 : f32 to vector<32x128xf32>
    %139 = arith.mulf %138, %135 : vector<32x128xf32>
    %140 = arith.select %137, %135, %139 : vector<32x128xi1>, vector<32x128xf32>
    %c0_60 = arith.constant 0 : index
    %c0_61 = arith.constant 0 : index
    %141 = vector.load %arg17[%c0_60, %c0_61] : memref<128x128xf32, #tpu.memory_space<vmem>>, vector<128x128xf32>
    %cst_62 = arith.constant dense<0.000000e+00> : vector<32x128xf32>
    %142 = tpu.matmul %140, %141, %cst_62 {dimension_numbers = #tpu.dot_dimension_numbers<[1], [0], [0], [1], [0, 0, 1, 1], [], []>} : vector<32x128xf32>, vector<128x128xf32>, vector<32x128xf32> -> vector<32x128xf32>
    %c0_63 = arith.constant 0 : index
    %c0_64 = arith.constant 0 : index
    %143 = vector.load %arg18[%c0_63, %c0_64] : memref<1x128xf32, #tpu.memory_space<vmem>>, vector<1x128xf32>
    %144 = vector.broadcast %143 : vector<1x128xf32> to vector<32x128xf32>
    %145 = arith.addf %142, %144 : vector<32x128xf32>
    %cst_65 = arith.constant dense<0.000000e+00> : vector<32xf32>
    %146 = vector.multi_reduction <add>, %145, %cst_65 [1] : vector<32x128xf32> to vector<32xf32>
    %147 = vector.shape_cast %146 : vector<32xf32> to vector<32x1xf32>
    %cst_66 = arith.constant 0.0294117648 : f32
    %148 = vector.broadcast %cst_66 : f32 to vector<32x1xf32>
    %149 = arith.mulf %147, %148 : vector<32x1xf32>
    %150 = arith.mulf %145, %145 : vector<32x128xf32>
    %cst_67 = arith.constant dense<0.000000e+00> : vector<32xf32>
    %151 = vector.multi_reduction <add>, %150, %cst_67 [1] : vector<32x128xf32> to vector<32xf32>
    %152 = vector.shape_cast %151 : vector<32xf32> to vector<32x1xf32>
    %cst_68 = arith.constant 0.0294117648 : f32
    %153 = vector.broadcast %cst_68 : f32 to vector<32x1xf32>
    %154 = arith.mulf %152, %153 : vector<32x1xf32>
    %155 = arith.mulf %149, %149 : vector<32x1xf32>
    %156 = arith.subf %154, %155 : vector<32x1xf32>
    %157 = vector.broadcast %149 : vector<32x1xf32> to vector<32x128xf32>
    %158 = arith.subf %145, %157 : vector<32x128xf32>
    %cst_69 = arith.constant 9.99999974E-6 : f32
    %159 = vector.broadcast %cst_69 : f32 to vector<32x1xf32>
    %160 = arith.addf %156, %159 : vector<32x1xf32>
    %161 = math.rsqrt %160 : vector<32x1xf32>
    %162 = vector.broadcast %161 : vector<32x1xf32> to vector<32x128xf32>
    %163 = arith.mulf %158, %162 : vector<32x128xf32>
    %c0_70 = arith.constant 0 : index
    %c0_71 = arith.constant 0 : index
    %164 = vector.load %arg19[%c0_70, %c0_71] : memref<1x128xf32, #tpu.memory_space<vmem>>, vector<1x128xf32>
    %165 = vector.broadcast %164 : vector<1x128xf32> to vector<32x128xf32>
    %166 = arith.mulf %163, %165 : vector<32x128xf32>
    %c0_72 = arith.constant 0 : index
    %c0_73 = arith.constant 0 : index
    %167 = vector.load %arg20[%c0_72, %c0_73] : memref<1x128xf32, #tpu.memory_space<vmem>>, vector<1x128xf32>
    %168 = vector.broadcast %167 : vector<1x128xf32> to vector<32x128xf32>
    %169 = arith.addf %166, %168 : vector<32x128xf32>
    %cst_74 = arith.constant 0.000000e+00 : f32
    %170 = vector.broadcast %cst_74 : f32 to vector<32x128xf32>
    %171 = arith.cmpf oge, %169, %170 : vector<32x128xf32>
    %cst_75 = arith.constant 3.000000e-01 : f32
    %172 = vector.broadcast %cst_75 : f32 to vector<32x128xf32>
    %173 = arith.mulf %172, %169 : vector<32x128xf32>
    %174 = arith.select %171, %169, %173 : vector<32x128xi1>, vector<32x128xf32>
    %c0_76 = arith.constant 0 : index
    %c0_77 = arith.constant 0 : index
    %175 = vector.load %arg21[%c0_76, %c0_77] : memref<128x128xf32, #tpu.memory_space<vmem>>, vector<128x128xf32>
    %cst_78 = arith.constant dense<0.000000e+00> : vector<32x128xf32>
    %176 = tpu.matmul %174, %175, %cst_78 {dimension_numbers = #tpu.dot_dimension_numbers<[1], [0], [0], [1], [0, 0, 1, 1], [], []>} : vector<32x128xf32>, vector<128x128xf32>, vector<32x128xf32> -> vector<32x128xf32>
    %c0_79 = arith.constant 0 : index
    %c0_80 = arith.constant 0 : index
    %177 = vector.load %arg22[%c0_79, %c0_80] : memref<1x128xf32, #tpu.memory_space<vmem>>, vector<1x128xf32>
    %178 = vector.broadcast %177 : vector<1x128xf32> to vector<32x128xf32>
    %179 = arith.addf %176, %178 : vector<32x128xf32>
    %c0_81 = arith.constant 0 : index
    %c0_82 = arith.constant 0 : index
    %180 = vector.load %arg23[%c0_81, %c0_82] : memref<32x128xf32, #tpu.memory_space<vmem>>, vector<32x128xf32>
    tpu.vector_store %arg23[%c0_81, %c0_82], %179 {strides = array<i32>} : memref<32x128xf32, #tpu.memory_space<vmem>>, vector<32x128xf32>,
    return
  }
}

</mosaic_0001>

<bundles_post_ra>
// kernel: tpu_custom_call.1
= control target key start
LH: loop header
LB: loop body
LE: loop exit
PB: predicated region body
PF: predicated region fallthrough
CT: control target
= control target key end

     0   :  { %s2103_s0 = inlined_call_operand.hbm [shape: f32[3,142], index: 0, kind: input, shape index: {}]   ;;  %s2104_s1 = inlined_call_operand.vmem [shape: f32[1,142], index: 1, kind: input, shape index: {}]   ;;  %s2105_s2 = inlined_call_operand.vmem [shape: f32[1,142], index: 2, kind: input, shape index: {}]   ;;  %s2106_s3 = inlined_call_operand.vmem [shape: f32[16,9], index: 3, kind: input, shape index: {}]   ;;  %s2107_s4 = inlined_call_operand.vmem [shape: f32[16,1], index: 4, kind: input, shape index: {}]   ;;  %s2108_s5 = inlined_call_operand.vmem [shape: f32[16,1], index: 5, kind: input, shape index: {}]   ;;  %s2109_s6 = inlined_call_operand.vmem [shape: f32[16,1], index: 6, kind: input, shape index: {}]   ;;  %s2110_s7 = inlined_call_operand.hbm [shape: f32[16,48], index: 7, kind: input, shape index: {}]   ;;  %s2111_s8 = inlined_call_operand.vmem [shape: f32[16,1], index: 8, kind: input, shape index: {}]   ;;  %s2112_s9 = inlined_call_operand.vmem [shape: f32[16,1], index: 9, kind: input, shape index: {}]   ;;  %s2113_s10 = inlined_call_operand.vmem [shape: f32[16,1], index: 10, kind: input, shape index: {}]   ;;  %s2114_s11 = inlined_call_operand.hbm [shape: f32[16,48], index: 11, kind: input, shape index: {}]   ;;  %s2115_s12 = inlined_call_operand.vmem [shape: f32[16,1], index: 12, kind: input, shape index: {}]   ;;  %s2116_s13 = inlined_call_operand.hbm [shape: f32[71,128], index: 13, kind: input, shape index: {}]   ;;  %s2117_s14 = inlined_call_operand.vmem [shape: f32[1,128], index: 14, kind: input, shape index: {}]   ;;  %s2118_s15 = inlined_call_operand.vmem [shape: f32[1,128], index: 15, kind: input, shape index: {}]   ;;  %s2119_s16 = inlined_call_operand.hbm [shape: f32[1,128], index: 16, kind: input, shape index: {}]   ;;  %s2120_s17 = inlined_call_operand.vmem [shape: f32[128,128], index: 17, kind: input, shape index: {}]   ;;  %s2121_s18 = inlined_call_operand.vmem [shape: f32[1,128], index: 18, kind: input, shape index: {}]   ;;  %s2122_s19 = inlined_call_operand.vmem [shape: f32[1,128], index: 19, kind: input, shape index: {}]   ;;  %s2123_s20 = inlined_call_operand.vmem [shape: f32[1,128], index: 20, kind: input, shape index: {}]   ;;  %s2124_s21 = inlined_call_operand.hbm [shape: f32[128,128], index: 21, kind: input, shape index: {}]   ;;  %s2125_s22 = inlined_call_operand.vmem [shape: f32[1,128], index: 22, kind: input, shape index: {}]   ;;  %s2126_s23 = inlined_call_operand.hbm [shape: f32[32,128], index: 23, kind: output, shape index: {}]  }
   0x1   :  { %2131 = sst [smem:[#allocation19_spill]] %s2103_s0 }
   0x2   :  { %2132 = sst [smem:[#allocation20_spill]] %s2104_s1 }
   0x3   :  { %2133 = sst [smem:[#allocation21_spill]] %s2105_s2 }
   0x4   :  { %2134 = sst [smem:[#allocation22_spill]] %s2106_s3 }
   0x5   :  { %2135 = sst [smem:[#allocation23_spill]] %s2107_s4 }
   0x6   :  { %2136 = sst [smem:[#allocation24_spill]] %s2108_s5 }
   0x7   :  { %2137 = sst [smem:[#allocation25_spill]] %s2109_s6 }
   0x8   :  { %2138 = sst [smem:[#allocation26_spill]] %s2110_s7 }
   0x9   :  { %28 = vsyncpa [#allocation3], 0 }
   0xa   :  { %29 = vsyncpa [#allocation6], 0 }
   0xb   :  { %30 = vsyncpa [#allocation9], 0 }
   0xc   :  { %31 = vsyncpa [#allocation12], 0 }
   0xd   :  { %32 = vsyncpa [#allocation4], 0  ;;  %s1675_s4 = smov [#allocation5]  }
   0xe   :  { %s60_s30 = sshll.u32 %s1675_s4, 4  ;;  %s61_s30 = int_to_ptr.vmem [resolvable:$true] %s60_s30 }
   0xf   :  { %s1533_s24 = scalar_lea.vmem %s61_s30, 256  ;;  %p1538_p1 = scmp.lt.s32.totalorder %s61_s30, %s61_s30 }
  0x10   :  { %p1534_p0 = scmp.ne.s32.totalorder %s61_s30, %s1533_s24  ;;  %p1539_p2 = scmp.lt.s32.totalorder %s1533_s24, %s1533_s24 }
  0x12   :  { %p1540_p3 = por %p1539_p2, %p1538_p1 }
  0x14   :  { %p1541_p4 = pnand %p1540_p3, %p1534_p0 }
  0x16   :  { %1544 = shalt.err (!%p1541_p4)
}
  0x17   :  { %s1676_s25 = smov 128   ;;  %s1677_s5 = smov 8  }
  0x18   :  { %s2139_s2 = sld [smem:[#allocation26_spill]]  ;;  %s1678_s6 = smov [#allocation8]  }
  0x19   :  { %s92_s27 = sshll.u32 %s1678_s6, 4  ;;  %s1679_s7 = smov [#allocation2]   ;;  %s93_s27 = int_to_ptr.vmem [resolvable:$true] %s92_s27 }
  0x1a   :  { %s39_s28 = sshll.u32 %s1679_s7, 4  ;;  %s1553_s29 = scalar_lea.vmem %s93_s27, 1152  ;;  %s40_s28 = int_to_ptr.vmem [resolvable:$true] %s39_s28 }
  0x1b   :  { %p1554_p5 = scmp.ne.s32.totalorder %s93_s27, %s1553_s29  ;;  %p1558_p6 = scmp.lt.s32.totalorder %s93_s27, %s93_s27 }
  0x1c   :  { %p1559_p7 = scmp.lt.s32.totalorder %s1553_s29, %s1553_s29 }
  0x1e   :  { %66 = dma.hbm_to_vmem [thread:$0]  %s2139_s2, 256, %s61_s30, [#allocation6], %s1676_s25, %s1676_s25, %s1677_s5  }
  0x1f   :  { %p1560_p8 = por %p1559_p7, %p1558_p6 }
  0x21   :  { %p1561_p9 = pnand %p1560_p8, %p1554_p5 }
  0x23   :  { %1564 = shalt.err (!%p1561_p9)
}
  0x24   :  { %98 = dma.hbm_to_vmem [thread:$0]  %s2116_s13, 1152, %s93_s27, [#allocation9], %s1676_s25, %s1676_s25, %s1677_s5  }
  0x25   :  { %s1573_s4 = scalar_lea.vmem %s40_s28, 128  ;;  %p1578_p11 = scmp.lt.s32.totalorder %s40_s28, %s40_s28 }
  0x26   :  { %p1574_p10 = scmp.ne.s32.totalorder %s40_s28, %s1573_s4  ;;  %p1579_p12 = scmp.lt.s32.totalorder %s1573_s4, %s1573_s4 }
  0x28   :  { %p1580_p13 = por %p1579_p12, %p1578_p11 }
  0x2a   :  { %p1581_p0 = pnand %p1580_p13, %p1574_p10 }
  0x2c   :  { %1584 = shalt.err (!%p1581_p0)
}
  0x2d   :  { %s2140_s1 = sld [smem:[#allocation19_spill]]  ;;  %s1680_s26 = smov [#allocation7]  }
  0x2e   :  { %s78_s2 = sshll.u32 %s1680_s26, 4  ;;  %s1681_s6 = smov [#allocation10]   ;;  %s79_s2 = int_to_ptr.vmem [resolvable:$true] %s78_s2 }
  0x2f   :  { %s109_s7 = sshll.u32 %s1681_s6, 4  ;;  %s1593_s29 = scalar_lea.vmem %s79_s2, 256  ;;  %s110_s7 = int_to_ptr.vmem [resolvable:$true] %s109_s7 }
  0x30   :  { %p1594_p1 = scmp.ne.s32.totalorder %s79_s2, %s1593_s29  ;;  %p1598_p2 = scmp.lt.s32.totalorder %s79_s2, %s79_s2 }
  0x31   :  { %p1599_p3 = scmp.lt.s32.totalorder %s1593_s29, %s1593_s29 }
  0x33   :  { %42 = dma.hbm_to_vmem [thread:$0]  %s2140_s1, 128, %s40_s28, [#allocation3]  }
  0x34   :  { %p1600_p4 = por %p1599_p3, %p1598_p2 }
  0x36   :  { %p1601_p5 = pnand %p1600_p4, %p1594_p1 }
  0x38   :  { %1604 = shalt.err (!%p1601_p5)
}
  0x39   :  { %84 = dma.hbm_to_vmem [thread:$0]  %s2114_s11, 256, %s79_s2, [#allocation6], %s1676_s25, %s1676_s25, %s1677_s5  }
  0x3a   :  { %s1613_s28 = scalar_lea.vmem %s110_s7, 16  ;;  %s1617_s3 = scalar_lea.vmem %s110_s7, 32 }
  0x3b   :  { %p1614_p6 = scmp.ne.s32.totalorder %s110_s7, %s1613_s28  ;;  %p1618_p7 = scmp.lt.s32.totalorder %s110_s7, %s110_s7 }
  0x3c   :  { %p1619_p8 = scmp.lt.s32.totalorder %s1617_s3, %s1613_s28 }
  0x3e   :  { %p1620_p9 = por %p1619_p8, %p1618_p7 }
  0x40   :  { %p1621_p10 = pnand %p1620_p9, %p1614_p6 }
  0x42   :  { %1624 = shalt.err (!%p1621_p10)
}
  0x43   :  { %112 = dma.hbm_to_vmem [thread:$0]  %s2119_s16, 16, %s110_s7, [#allocation9]  }
  0x44   :  { %s1682_s30 = smov [#allocation11]  }
  0x45   :  { %s126_s24 = sshll.u32 %s1682_s30, 4  ;;  %s127_s24 = int_to_ptr.vmem [resolvable:$true] %s126_s24 }
  0x46   :  { %s1633_s1 = scalar_lea.vmem %s127_s24, 2048  ;;  %p1638_p12 = scmp.lt.s32.totalorder %s127_s24, %s127_s24 }
  0x47   :  { %p1634_p11 = scmp.ne.s32.totalorder %s127_s24, %s1633_s1  ;;  %p1639_p13 = scmp.lt.s32.totalorder %s1633_s1, %s1633_s1 }
  0x49   :  { %p1640_p0 = por %p1639_p13, %p1638_p12 }
  0x4b   :  { %p1641_p1 = pnand %p1640_p0, %p1634_p11 }
  0x4d   :  { %1644 = shalt.err (!%p1641_p1)
}
  0x4e   :  { %132 = dma.hbm_to_vmem [thread:$0]  %s2124_s21, 2048, %s127_s24, [#allocation12], %s1676_s25, %s1676_s25, %s1677_s5  }
  0x4f   :  { %1665 = dma.done.wait [#allocation3], 128  }
  0x50   :  { %1666 = vsyncadd [#allocation3], 4294967168 }
  0x51   :  { %1667 = dma.done.wait [#allocation6], 512  }
  0x52   :  { %1668 = vsyncadd [#allocation6], 4294966784 }
  0x53   :  { %1669 = dma.done.wait [#allocation9], 1168  }
  0x54   :  { %1670 = vsyncadd [#allocation9], 4294966128 }
  0x55   :  { %1671 = dma.done.wait [#allocation12], 2048  }
  0x56   :  { %1672 = vsyncadd [#allocation12], 4294965248  ;;  %v155_v0 = vld [vmem:[#allocation2] sm:$0x77]  ;;  %s1683_s16 = smov 1   ;;  %s1684_s2 = smov 127   ;;  %v168_v6 = vlaneseq }
  0x57   :  { %158 = vrot.lane.b32.xlu1 %v155_v0, %s1683_s16  ;;  %v157_v1 = vcombine.high %v155_v0, %v155_v0  ;;  %v1685_v2 = vmov 0.0   ;;  %s2141_s7 = sld [smem:[#allocation23_spill]]  ;;  %v1686_v4 = vmov 0   ;;  %vm188_vm0 = vcmask 105472  }
  0x58   :  { %309 = vmatprep.mubr.f32.mxu1 %v1685_v2  ;;  %534 = vmatprep.mubr.f32.mxu0 %v1685_v2  ;;  %v169_v7 = vshrl.u32 %v168_v6, 7  ;;  %s2142_s3 = sld [smem:[#allocation21_spill]]  ;;  %vm162_vm1 = vcmask 7168   ;;  %vm184_vm2 = vcmask 1039360   ;;  %vm240_vm3 = vcmask 1040384  }
  0x59   :  { %182 = vrot.lane.b32.xlu0 %v157_v1, %s1684_s2  ;;  %1499 = vset.pattern.permute.xlu1 %v1686_v4  ;;  %s2143_s30 = sld [smem:[#allocation20_spill]]  ;;  %v204_v23 = vrot.slane %v157_v1, 5  ;;  %vm213_vm4 = vcmask 1042432   ;;  %v203_v27 = vrot.slane %v155_v0, 5  ;;  %vm216_vm5 = vcmask 1045504  }
  0x5a   :  { %1498 = vset.pattern.permute.xlu0 %v1686_v4  ;;  %v174_v8 = vsub.s32 1, %v169_v7  ;;  %v170_v10 = vsub.s32 0, %v169_v7  ;;  %s2144_s11 = sld [smem:[#allocation22_spill]]  ;;  %vm233_vm6 = vcmask 72704   ;;  %vm322_vm7 = vcmask 113664  }
  0x5b   :  { %160 = vrot.lane.b32.xlu1 %v157_v1, %s1683_s16  ;;  %s2145_s29 = sld [smem:[#allocation24_spill]]  ;;  %vm463_vm12 = vcmask 392192  }
  0x5c   :  { %s2146_s0 = sld [smem:[#allocation25_spill]] }
  0x5d   :  { %v221_v3 = vld [vmem:[%s2141_s7] sm:$0xff]  ;;  %180 = vrot.lane.b32.xlu0 %v155_v0, %s1684_s2  ;;  %v222_v5 = vld [vmem:[%s2141_s7 + $0x8] sm:$0xff] }
  0x5e   :  { %v154_v9 = vld [vmem:[%s2142_s3] sm:$0x3] }
  0x5f   :  { %225 = vperm.xlu1 %1499, %v221_v3   ;;  %v153_v11 = vld [vmem:[%s2143_s30] sm:$0x3]  ;;  %v1857_v13 = vrot.slane %v154_v9, %v174_v8  ;;  %v1865_v20 = vrot.slane %v154_v9, %v170_v10 }
  0x60   :  { %v1859_v15 = vrot.slane %v153_v11, %v174_v8  ;;  %v1861_v16 = vrot.slane %v153_v11, %v170_v10  ;;  %v219_v36 = vld [vmem:[%s2144_s11] sm:$0xff]  ;;  %v220_v37 = vld [vmem:[%s2144_s11 + $0x8] sm:$0xff] }
  0x61   :  { %230 = vperm.xlu0 %1498, %v222_v5   ;;  %v352_v11 = vld [vmem:[%s2145_s29 + $0x8] sm:$0xff] }
  0xc9   :  { %v159_v12 = vpop.permute.xlu1 %158 }
  0xca   :  { %v166_v18 = vsel %vm162_vm1, 0.0, %v159_v12 }
  0xcb   :  { %v183_v14 = vpop.permute.xlu0 %182  ;;  %v178_v28 = vmul.f32 %v1861_v16, %v166_v18 }
  0xcc   :  { %v189_v17 = vsel %vm188_vm0, %v183_v14, 0.0 }
  0xcd   :  { %v161_v19 = vpop.permute.xlu1 %160  ;;  %v202_v21 = vmul.f32 %v1857_v13, %v189_v17  ;;  %v214_v33 = vsel %vm213_vm4, %v178_v28, %v203_v27 }
  0xce   :  { %v163_v22 = vsel %vm162_vm1, %v159_v12, %v161_v19 }
  0xcf   :  { %v179_v24 = vmul.f32 %v1859_v15, %v163_v22  ;;  %v181_v25 = vpop.permute.xlu0 %180  ;;  %v210_v26 = vrot.slane %v202_v21, 2  ;;  %v359_v22 = vld [vmem:[%s2146_s0] sm:$0xff] }
  0xd0   :  { %v185_v29 = vsel %vm184_vm2, %v181_v25, %v183_v14  ;;  %v351_v14 = vld [vmem:[%s2145_s29] sm:$0xff] }
  0xd1   :  { %v201_v30 = vmul.f32 %v1865_v20, %v185_v29  ;;  %1311 = vmatprep.subr.msk.mxu1 %vm240_vm3, %v210_v26  ;;  %v215_v31 = vsel %vm213_vm4, %v179_v24, %v204_v23  ;;  %v360_v23 = vld [vmem:[%s2146_s0 + $0x8] sm:$0xff]  ;;  %vm810_vm4 = vcmask 1046528  }
  0xd2   :  { %v218_v34 = vsel %vm216_vm5, %v215_v31, %v210_v26 }
  0xd3   :  { %v209_v32 = vrot.slane %v201_v30, 2 }
  0xd5   :  { %1312 = vmatpush1.msk.msra.mxu1 %vm240_vm3, %v209_v32  ;;  %v217_v35 = vsel %vm216_vm5, %v214_v33, %v209_v32 }
  0xd6   :  { %275 = vmatprep.subr.mxu1 %v218_v34 }
  0xd7   :  { %276 = vmatpush1.msra.mxu1 %v217_v35 }
  0xd8   :  { %1313 = vmatmul.mubr.msk.f32.vlgmr.msra.gmra.mxu1 %vm233_vm6, %v219_v36 }
  0xd9   :  { %315 = vmatprep.mubr.f32.mxu1 %v1685_v2 }
  0xda   :  { %v226_v39 = vpop.permute.xlu1 %225 }
  0xdc   :  { %1314 = vmatmul.mubr.msk.f32.gmra.mxu1 %vm233_vm6, %v220_v37  ;;  %v231_v42 = vpop.permute.xlu0 %230 }
 0x198   :  { %v311_v38 = vpop.f32.mrf.mxu1 }
 0x199   :  { %v312_v43 = vadd.f32 %v311_v38, %v226_v39 }
 0x19a   :  { %v313_v40 = vpop.f32.mrf.mxu1 }
 0x19b   :  { %v314_v41 = vadd.f32 %v313_v40, %v226_v39  ;;  %v333_v58 = vmul.f32 %v312_v43, %v312_v43 }
 0x19c   :  { %v317_v44 = vpop.f32.mrf.mxu1 }
 0x19d   :  { %v323_v45 = vsel %vm322_vm7, %v314_v41, 0.0  ;;  %v318_v46 = vadd.f32 %v317_v44, %v231_v42  ;;  %v334_v50 = vmul.f32 %v314_v41, %v314_v41 }
 0x19e   :  { %v319_v47 = vpop.f32.mrf.mxu1  ;;  %v324_v48 = vadd.f32 %v323_v45, %v312_v43 }
 0x19f   :  { %v320_v49 = vadd.f32 %v319_v47, %v231_v42  ;;  %v335_v54 = vmul.f32 %v318_v46, %v318_v46  ;;  %v337_v56 = vsel %vm322_vm7, %v334_v50, 0.0 }
 0x1a0   :  { %325 = vadd.xlane.f32.xlu0 %v324_v48  ;;  %v338_v59 = vadd.f32 %v337_v56, %v333_v58  ;;  %v451_v48 = vld [vmem:[%s2111_s8] sm:$0xff] }
 0x1a1   :  { %v327_v51 = vsel %vm322_vm7, %v320_v49, 0.0  ;;  %v336_v52 = vmul.f32 %v320_v49, %v320_v49 }
 0x1a2   :  { %v328_v53 = vadd.f32 %v327_v51, %v318_v46 }
 0x1a3   :  { %v341_v55 = vsel %vm322_vm7, %v336_v52, 0.0 }
 0x1a4   :  { %329 = vadd.xlane.f32.xlu1 %v328_v53  ;;  %v342_v57 = vadd.f32 %v341_v55, %v335_v54 }
 0x1a6   :  { %343 = vadd.xlane.f32.xlu0 %v342_v57 }
 0x1a8   :  { %339 = vadd.xlane.f32.xlu1 %v338_v59 }
 0x229   :  { %v326_v60 = vpop.xlane.xlu0 %325 }
 0x22a   :  { %v331_v62 = vmul.f32 0.0070422534, %v326_v60 }
 0x22c   :  { %v347_v5 = vmul.f32 %v331_v62, %v331_v62 }
 0x22d   :  { %v330_v61 = vpop.xlane.xlu1 %329 }
 0x22e   :  { %v332_v63 = vmul.f32 0.0070422534, %v330_v61 }
 0x22f   :  { %v344_v0 = vpop.xlane.xlu0 %343 }
 0x230   :  { %v348_v1 = vmul.f32 %v332_v63, %v332_v63  ;;  %v346_v3 = vmul.f32 0.0070422534, %v344_v0 }
 0x231   :  { %v340_v4 = vpop.xlane.xlu1 %339 }
 0x232   :  { %v350_v6 = vsub.f32 %v346_v3, %v348_v1  ;;  %v345_v7 = vmul.f32 0.0070422534, %v340_v4 }
 0x234   :  { %v354_v8 = vadd.f32 1e-05, %v350_v6  ;;  %v349_v9 = vsub.f32 %v345_v7, %v347_v5 }
 0x236   :  { %1501 = vrsqrt.f32 %v354_v8  ;;  %v353_v10 = vadd.f32 1e-05, %v349_v9 }
 0x238   :  { %1503 = vrsqrt.f32 %v353_v10  ;;  %v449_v10 = vld [vmem:[#allocation5] sm:$0xff] }
 0x243   :  { %v1502_v12 = vpop.eup %1501 }
 0x244   :  { %v358_v17 = vmul.f32 %v1502_v12, %v352_v11  ;;  %v450_v11 = vld [vmem:[#allocation5 + $0x8] sm:$0xff] }
 0x245   :  { %v1504_v18 = vpop.eup %1503 }
 0x246   :  { %372 = vperm.xlu0 %1498, %v358_v17   ;;  %v357_v19 = vmul.f32 %v1504_v18, %v351_v14  ;;  %v362_v21 = vmul.f32 %v358_v17, %v332_v63 }
 0x248   :  { %367 = vperm.xlu1 %1499, %v357_v19   ;;  %v361_v24 = vmul.f32 %v357_v19, %v331_v62  ;;  %v364_v26 = vsub.f32 %v360_v23, %v362_v21 }
 0x24a   :  { %v363_v25 = vsub.f32 %v359_v22, %v361_v24 }
 0x24c   :  { %381 = vperm.xlu0 %1498, %v363_v25   ;;  %386 = vperm.xlu1 %1499, %v364_v26  }
 0x2c1   :  { %v373_v27 = vpop.permute.xlu0 %372 }
 0x2c2   :  { %v377_v29 = vmul.f32 %v373_v27, %v318_v46  ;;  %v378_v30 = vmul.f32 %v373_v27, %v320_v49  ;;  %v452_v46 = vld [vmem:[%s2111_s8 + $0x8] sm:$0xff] }
 0x2c3   :  { %v368_v28 = vpop.permute.xlu1 %367 }
 0x2c4   :  { %v375_v31 = vmul.f32 %v368_v28, %v312_v43  ;;  %v376_v32 = vmul.f32 %v368_v28, %v314_v41 }
 0x2c7   :  { %v382_v33 = vpop.permute.xlu0 %381  ;;  %v387_v34 = vpop.permute.xlu1 %386 }
 0x2c8   :  { %v389_v35 = vadd.f32 %v382_v33, %v375_v31  ;;  %v390_v36 = vadd.f32 %v382_v33, %v376_v32  ;;  %v391_v37 = vadd.f32 %v387_v34, %v377_v29  ;;  %v392_v38 = vadd.f32 %v387_v34, %v378_v30 }
 0x2ca   :  { %vm396_vm8 = vcmp.ge.f32.partialorder %v392_v38, 0.0  ;;  %v400_v39 = vmul.f32 0.3, %v392_v38  ;;  %vm395_vm9 = vcmp.ge.f32.partialorder %v391_v37, 0.0  ;;  %v399_v40 = vmul.f32 0.3, %v391_v37 }
 0x2cb   :  { %v398_v45 = vmul.f32 0.3, %v390_v36  ;;  %v397_v47 = vmul.f32 0.3, %v389_v35  ;;  %vm394_vm10 = vcmp.ge.f32.partialorder %v390_v36, 0.0  ;;  %vm393_vm11 = vcmp.ge.f32.partialorder %v389_v35, 0.0 }
 0x2cc   :  { %v404_v42 = vsel %vm396_vm8, %v392_v38, %v400_v39  ;;  %v403_v44 = vsel %vm395_vm9, %v391_v37, %v399_v40 }
 0x2cd   :  { %435 = vrot.lane.b32.xlu1 %v404_v42, %s1684_s2  ;;  %433 = vrot.lane.b32.xlu0 %v403_v44, %s1684_s2  ;;  %v402_v41 = vsel %vm394_vm10, %v390_v36, %v398_v45  ;;  %v401_v43 = vsel %vm393_vm11, %v389_v35, %v397_v47 }
 0x2d1   :  { %431 = vrot.lane.b32.xlu1 %v402_v41, %s1684_s2  ;;  %429 = vrot.lane.b32.xlu0 %v401_v43, %s1684_s2 }
 0x2d5   :  { %413 = vrot.lane.b32.xlu1 %v403_v44, %s1683_s16  ;;  %415 = vrot.lane.b32.xlu0 %v404_v42, %s1683_s16 }
 0x2d9   :  { %409 = vrot.lane.b32.xlu1 %v401_v43, %s1683_s16  ;;  %411 = vrot.lane.b32.xlu0 %v402_v41, %s1683_s16 }
 0x2dd   :  { %460 = vperm.xlu1 %1499, %v452_v46   ;;  %455 = vperm.xlu0 %1498, %v451_v48  }
 0x33f   :  { %v436_v49 = vpop.permute.xlu1 %435  ;;  %v434_v50 = vpop.permute.xlu0 %433 }
 0x340   :  { %v438_v51 = vsel %vm184_vm2, %v434_v50, %v436_v49  ;;  %v444_v52 = vsel %vm188_vm0, %v436_v49, 0.0 }
 0x341   :  { %v448_v53 = vmul.f32 %v444_v52, %v1857_v13  ;;  %v447_v54 = vmul.f32 %v438_v51, %v1865_v20  ;;  %v576_v52 = vld [vmem:[%s2112_s9 + $0x8] sm:$0xff] }
 0x343   :  { %490 = vmatprep.subr.mxu0 %v448_v53  ;;  %v432_v55 = vpop.permute.xlu1 %431  ;;  %v430_v56 = vpop.permute.xlu0 %429 }
 0x344   :  { %v443_v57 = vsel %vm188_vm0, %v432_v55, 0.0  ;;  %v437_v58 = vsel %vm184_vm2, %v430_v56, %v432_v55  ;;  %491 = vmatpush1.msra.mxu0 %v447_v54  ;;  %v575_v54 = vld [vmem:[%s2112_s9] sm:$0xff]  ;;  %s1688_s9 = smov [#allocation13]  }
 0x345   :  { %v446_v59 = vmul.f32 %v443_v57, %v1857_v13  ;;  %v445_v60 = vmul.f32 %v437_v58, %v1865_v20 }
 0x347   :  { %v414_v61 = vpop.permute.xlu1 %413  ;;  %492 = vmatprep.subr.mxu0 %v446_v59  ;;  %v416_v62 = vpop.permute.xlu0 %415  ;;  %v583_v59 = vld [vmem:[%s2113_s10] sm:$0xff] }
 0x348   :  { %v418_v63 = vsel %vm162_vm1, %v414_v61, %v416_v62  ;;  %493 = vmatpush1.msra.mxu0 %v445_v60  ;;  %v424_v0 = vsel %vm162_vm1, 0.0, %v414_v61  ;;  %v584_v60 = vld [vmem:[%s2113_s10 + $0x8] sm:$0xff]  ;;  %s1296_s10 = sshll.u32 %s1688_s9, 4  ;;  %s1297_s10 = int_to_ptr.vmem [resolvable:$true] %s1296_s10 }
 0x349   :  { %494 = vmatprep.subr.mxu0 %v404_v42  ;;  %v428_v1 = vmul.f32 %v418_v63, %v1859_v15  ;;  %v427_v5 = vmul.f32 %v424_v0, %v1861_v16  ;;  %s1645_s3 = scalar_lea.vmem %s1297_s10, 512  ;;  %p1650_p3 = scmp.lt.s32.totalorder %s1297_s10, %s1297_s10 }
 0x34a   :  { %495 = vmatpush1.msra.mxu0 %v403_v44  ;;  %p1646_p2 = scmp.ne.s32.totalorder %s1297_s10, %s1645_s3  ;;  %p1651_p4 = scmp.lt.s32.totalorder %s1645_s3, %s1645_s3 }
 0x34b   :  { %v410_v3 = vpop.permute.xlu1 %409  ;;  %496 = vmatprep.subr.mxu0 %v402_v41  ;;  %v412_v4 = vpop.permute.xlu0 %411 }
 0x34c   :  { %v423_v6 = vsel %vm162_vm1, 0.0, %v410_v3  ;;  %v417_v7 = vsel %vm162_vm1, %v410_v3, %v412_v4  ;;  %497 = vmatpush1.msra.mxu0 %v401_v43  ;;  %p1652_p5 = por %p1651_p4, %p1650_p3 }
 0x34d   :  { %v425_v8 = vmul.f32 %v423_v6, %v1861_v16  ;;  %v426_v9 = vmul.f32 %v417_v7, %v1859_v15  ;;  %498 = vmatprep.subr.mxu0 %v428_v1 }
 0x34e   :  { %499 = vmatpush1.msra.mxu0 %v427_v5  ;;  %p1653_p6 = pnand %p1652_p5, %p1646_p2 }
 0x34f   :  { %500 = vmatprep.subr.mxu0 %v426_v9 }
 0x350   :  { %501 = vmatpush1.msra.mxu0 %v425_v8 }
 0x351   :  { %1315 = vmatmul.mubr.msk.f32.vlgmr.msra.gmra.mxu0 %vm463_vm12, %v449_v10 }
 0x352   :  { %540 = vmatprep.mubr.f32.mxu0 %v1685_v2 }
 0x355   :  { %1316 = vmatmul.mubr.msk.f32.gmra.mxu0 %vm463_vm12, %v450_v11 }
 0x356   :  { %757 = vmatprep.mubr.f32.mxu0 %v1685_v2 }
 0x358   :  { %v456_v14 = vpop.permute.xlu0 %455  ;;  %v461_v22 = vpop.permute.xlu1 %460 }
 0x411   :  { %v536_v12 = vpop.f32.mrf.mxu0 }
 0x412   :  { %v537_v19 = vadd.f32 %v536_v12, %v456_v14 }
 0x413   :  { %v538_v17 = vpop.f32.mrf.mxu0 }
 0x414   :  { %v539_v18 = vadd.f32 %v538_v17, %v456_v14  ;;  %v557_v36 = vmul.f32 %v537_v19, %v537_v19 }
 0x415   :  { %v542_v21 = vpop.f32.mrf.mxu0 }
 0x416   :  { %v547_v23 = vsel %vm322_vm7, %v539_v18, 0.0  ;;  %v543_v24 = vadd.f32 %v542_v21, %v461_v22  ;;  %v558_v28 = vmul.f32 %v539_v18, %v539_v18 }
 0x417   :  { %v544_v25 = vpop.f32.mrf.mxu0  ;;  %v548_v26 = vadd.f32 %v547_v23, %v537_v19 }
 0x418   :  { %v545_v27 = vadd.f32 %v544_v25, %v461_v22  ;;  %v559_v32 = vmul.f32 %v543_v24, %v543_v24  ;;  %v561_v34 = vsel %vm322_vm7, %v558_v28, 0.0  ;;  %v676_v28 = vld [vmem:[%s2115_s12 + $0x8] sm:$0xff] }
 0x419   :  { %549 = vadd.xlane.f32.xlu0 %v548_v26  ;;  %v562_v37 = vadd.f32 %v561_v34, %v557_v36  ;;  %v792_v26 = vld [vmem:[#allocation8 + $0x38] sm:$0xff] }
 0x41a   :  { %v551_v29 = vsel %vm322_vm7, %v545_v27, 0.0  ;;  %v560_v30 = vmul.f32 %v545_v27, %v545_v27 }
 0x41b   :  { %v552_v31 = vadd.f32 %v551_v29, %v543_v24  ;;  %v791_v29 = vld [vmem:[#allocation8 + $0x30] sm:$0xff] }
 0x41c   :  { %v565_v33 = vsel %vm322_vm7, %v560_v30, 0.0  ;;  %v790_v30 = vld [vmem:[#allocation8 + $0x28] sm:$0xff] }
 0x41d   :  { %553 = vadd.xlane.f32.xlu1 %v552_v31  ;;  %v566_v35 = vadd.f32 %v565_v33, %v559_v32  ;;  %v789_v31 = vld [vmem:[#allocation8 + $0x20] sm:$0xff]  ;;  %v788_v32 = vld [vmem:[#allocation8 + $0x18] sm:$0xff] }
 0x41f   :  { %567 = vadd.xlane.f32.xlu0 %v566_v35 }
 0x421   :  { %563 = vadd.xlane.f32.xlu1 %v562_v37 }
 0x4a2   :  { %v550_v38 = vpop.xlane.xlu0 %549 }
 0x4a3   :  { %v555_v40 = vmul.f32 0.0070422534, %v550_v38 }
 0x4a5   :  { %v571_v43 = vmul.f32 %v555_v40, %v555_v40 }
 0x4a6   :  { %v554_v39 = vpop.xlane.xlu1 %553 }
 0x4a7   :  { %v556_v42 = vmul.f32 0.0070422534, %v554_v39 }
 0x4a8   :  { %v568_v44 = vpop.xlane.xlu0 %567 }
 0x4a9   :  { %v572_v45 = vmul.f32 %v556_v42, %v556_v42  ;;  %v570_v47 = vmul.f32 0.0070422534, %v568_v44 }
 0x4aa   :  { %v564_v41 = vpop.xlane.xlu1 %563 }
 0x4ab   :  { %v574_v46 = vsub.f32 %v570_v47, %v572_v45  ;;  %v569_v48 = vmul.f32 0.0070422534, %v564_v41 }
 0x4ad   :  { %v578_v49 = vadd.f32 1e-05, %v574_v46  ;;  %v573_v50 = vsub.f32 %v569_v48, %v571_v43 }
 0x4af   :  { %1505 = vrsqrt.f32 %v578_v49  ;;  %v577_v51 = vadd.f32 1e-05, %v573_v50 }
 0x4b1   :  { %1507 = vrsqrt.f32 %v577_v51 }
 0x4bc   :  { %v1506_v53 = vpop.eup %1505 }
 0x4bd   :  { %v582_v55 = vmul.f32 %v1506_v53, %v576_v52 }
 0x4be   :  { %v1508_v56 = vpop.eup %1507 }
 0x4bf   :  { %596 = vperm.xlu0 %1498, %v582_v55   ;;  %v581_v57 = vmul.f32 %v1508_v56, %v575_v54  ;;  %v586_v58 = vmul.f32 %v582_v55, %v556_v42  ;;  %v673_v55 = vld [vmem:[#allocation7] sm:$0xff]  ;;  %v674_v56 = vld [vmem:[#allocation7 + $0x8] sm:$0xff] }
 0x4c1   :  { %591 = vperm.xlu1 %1499, %v581_v57   ;;  %v585_v61 = vmul.f32 %v581_v57, %v555_v40  ;;  %v588_v63 = vsub.f32 %v584_v60, %v586_v58  ;;  %v787_v57 = vld [vmem:[#allocation8 + $0x10] sm:$0xff]  ;;  %v786_v58 = vld [vmem:[#allocation8 + $0x8] sm:$0xff] }
 0x4c3   :  { %v587_v62 = vsub.f32 %v583_v59, %v585_v61 }
 0x4c5   :  { %605 = vperm.xlu0 %1498, %v587_v62   ;;  %610 = vperm.xlu1 %1499, %v588_v63  }
 0x53a   :  { %v597_v0 = vpop.permute.xlu0 %596 }
 0x53b   :  { %v601_v3 = vmul.f32 %v597_v0, %v543_v24  ;;  %v602_v4 = vmul.f32 %v597_v0, %v545_v27  ;;  %v793_v24 = vld [vmem:[#allocation8 + $0x40] sm:$0x7f]  ;;  %v675_v27 = vld [vmem:[%s2115_s12] sm:$0xff]  ;;  %s1687_s12 = smov 57  }
 0x53c   :  { %v592_v1 = vpop.permute.xlu1 %591  ;;  %1384 = vmatprep.subr.msk.mxu1 %vm810_vm4, %v793_v24 }
 0x53d   :  { %v599_v5 = vmul.f32 %v592_v1, %v537_v19  ;;  %v600_v6 = vmul.f32 %v592_v1, %v539_v18  ;;  %1385 = vmatpush3.msk.msra.mxu1 %vm810_vm4, %v793_v24  ;;  %v996_v24 = vld [vmem:[%s2120_s17 + $0x58] sm:$0xff] }
 0x53e   :  { %1386 = vmatprep.subr.mxu1 %v792_v26 }
 0x53f   :  { %1387 = vmatpush3.msra.mxu1 %v792_v26  ;;  %v995_v26 = vld [vmem:[%s2120_s17 + $0x50] sm:$0xff] }
 0x540   :  { %v606_v7 = vpop.permute.xlu0 %605  ;;  %v611_v8 = vpop.permute.xlu1 %610  ;;  %1388 = vmatprep.subr.mxu1 %v791_v29 }
 0x541   :  { %v613_v9 = vadd.f32 %v606_v7, %v599_v5  ;;  %v614_v10 = vadd.f32 %v606_v7, %v600_v6  ;;  %v615_v11 = vadd.f32 %v611_v8, %v601_v3  ;;  %v616_v12 = vadd.f32 %v611_v8, %v602_v4  ;;  %1389 = vmatpush3.msra.mxu1 %v791_v29  ;;  %v992_v29 = vld [vmem:[%s2120_s17 + $0x38] sm:$0xff] }
 0x542   :  { %1390 = vmatprep.subr.mxu1 %v790_v30 }
 0x543   :  { %vm620_vm13 = vcmp.ge.f32.partialorder %v616_v12, 0.0  ;;  %v624_v14 = vmul.f32 0.3, %v616_v12  ;;  %vm619_vm14 = vcmp.ge.f32.partialorder %v615_v11, 0.0  ;;  %v623_v17 = vmul.f32 0.3, %v615_v11  ;;  %1391 = vmatpush3.msra.mxu1 %v790_v30 }
 0x544   :  { %v622_v23 = vmul.f32 0.3, %v614_v10  ;;  %v621_v25 = vmul.f32 0.3, %v613_v9  ;;  %vm618_vm15 = vcmp.ge.f32.partialorder %v614_v10, 0.0  ;;  %vm617_vm3 = vcmp.ge.f32.partialorder %v613_v9, 0.0  ;;  %1392 = vmatprep.subr.mxu1 %v789_v31 }
 0x545   :  { %v628_v21 = vsel %vm620_vm13, %v616_v12, %v624_v14  ;;  %v627_v22 = vsel %vm619_vm14, %v615_v11, %v623_v17  ;;  %1393 = vmatpush3.msra.mxu1 %v789_v31  ;;  %v991_v30 = vld [vmem:[%s2120_s17 + $0x30] sm:$0xff]  ;;  %v990_v31 = vld [vmem:[%s2120_s17 + $0x28] sm:$0xff] }
 0x546   :  { %659 = vrot.lane.b32.xlu1 %v628_v21, %s1684_s2  ;;  %657 = vrot.lane.b32.xlu0 %v627_v22, %s1684_s2  ;;  %v626_v18 = vsel %vm618_vm15, %v614_v10, %v622_v23  ;;  %v625_v19 = vsel %vm617_vm3, %v613_v9, %v621_v25  ;;  %v1319_v10 = vld [vmem:[%s2117_s14] ss:$0 sm:$0xff]  ;;  %v1000_v23 = vld [vmem:[%s2120_s17 + $0x78] sm:$0xff] }
 0x547   :  { %1394 = vmatprep.subr.mxu1 %v788_v32  ;;  %v999_v25 = vld [vmem:[%s2120_s17 + $0x70] sm:$0xff] }
 0x548   :  { %1395 = vmatpush3.msra.mxu1 %v788_v32  ;;  %v989_v32 = vld [vmem:[%s2120_s17 + $0x20] sm:$0xff] }
 0x549   :  { %1396 = vmatprep.subr.mxu1 %v787_v57 }
 0x54a   :  { %655 = vrot.lane.b32.xlu1 %v626_v18, %s1684_s2  ;;  %653 = vrot.lane.b32.xlu0 %v625_v19, %s1684_s2 }
 0x54b   :  { %1397 = vmatpush3.msra.mxu1 %v787_v57  ;;  %v1325_v57 = vld [vmem:[%s2118_s15] ss:$0 sm:$0xff] }
 0x54c   :  { %1398 = vmatprep.subr.mxu1 %v786_v58 }
 0x54d   :  { %1399 = vmatpush3.msra.mxu1 %v786_v58 }
 0x54e   :  { %637 = vrot.lane.b32.xlu1 %v627_v22, %s1683_s16  ;;  %639 = vrot.lane.b32.xlu0 %v628_v21, %s1683_s16 }
 0x552   :  { %633 = vrot.lane.b32.xlu1 %v625_v19, %s1683_s16  ;;  %635 = vrot.lane.b32.xlu0 %v626_v18, %s1683_s16 }
 0x556   :  { %679 = vperm.xlu1 %1499, %v675_v27   ;;  %684 = vperm.xlu0 %1498, %v676_v28   ;;  %v994_v27 = vld [vmem:[%s2120_s17 + $0x48] sm:$0xff]  ;;  %v993_v28 = vld [vmem:[%s2120_s17 + $0x40] sm:$0xff] }
 0x5b8   :  { %v660_v33 = vpop.permute.xlu1 %659  ;;  %v658_v34 = vpop.permute.xlu0 %657 }
 0x5b9   :  { %v668_v35 = vsel %vm188_vm0, %v660_v33, 0.0  ;;  %v662_v36 = vsel %vm184_vm2, %v658_v34, %v660_v33  ;;  %v988_v33 = vld [vmem:[%s2120_s17 + $0x18] sm:$0xff]  ;;  %v987_v34 = vld [vmem:[%s2120_s17 + $0x10] sm:$0xff] }
 0x5ba   :  { %v672_v37 = vmul.f32 %v668_v35, %v1857_v13  ;;  %v671_v38 = vmul.f32 %v662_v36, %v1865_v20  ;;  %v986_v35 = vld [vmem:[%s2120_s17 + $0x8] sm:$0xff]  ;;  %v985_v36 = vld [vmem:[%s2120_s17] sm:$0xff] }
 0x5bc   :  { %713 = vmatprep.subr.mxu0 %v672_v37  ;;  %v656_v39 = vpop.permute.xlu1 %655  ;;  %v654_v40 = vpop.permute.xlu0 %653 }
 0x5bd   :  { %v667_v42 = vsel %vm188_vm0, %v656_v39, 0.0  ;;  %v661_v44 = vsel %vm184_vm2, %v654_v40, %v656_v39  ;;  %714 = vmatpush1.msra.mxu0 %v671_v38  ;;  %vm801_vm0 = vcmask 580608  }
 0x5be   :  { %v670_v45 = vmul.f32 %v667_v42, %v1857_v13  ;;  %v669_v47 = vmul.f32 %v661_v44, %v1865_v20 }
 0x5c0   :  { %v638_v41 = vpop.permute.xlu1 %637  ;;  %715 = vmatprep.subr.mxu0 %v670_v45  ;;  %v640_v43 = vpop.permute.xlu0 %639 }
 0x5c1   :  { %v642_v46 = vsel %vm162_vm1, %v638_v41, %v640_v43  ;;  %716 = vmatpush1.msra.mxu0 %v669_v47  ;;  %v648_v48 = vsel %vm162_vm1, 0.0, %v638_v41 }
 0x5c2   :  { %717 = vmatprep.subr.mxu0 %v628_v21  ;;  %v652_v49 = vmul.f32 %v642_v46, %v1859_v15  ;;  %v651_v52 = vmul.f32 %v648_v48, %v1861_v16 }
 0x5c3   :  { %718 = vmatpush1.msra.mxu0 %v627_v22 }
 0x5c4   :  { %v634_v50 = vpop.permute.xlu1 %633  ;;  %719 = vmatprep.subr.mxu0 %v626_v18  ;;  %v636_v51 = vpop.permute.xlu0 %635  ;;  %v998_v18 = vld [vmem:[%s2120_s17 + $0x68] sm:$0xff] }
 0x5c5   :  { %v647_v13 = vsel %vm162_vm1, 0.0, %v634_v50  ;;  %v641_v20 = vsel %vm162_vm1, %v634_v50, %v636_v51  ;;  %720 = vmatpush1.msra.mxu0 %v625_v19  ;;  %vm782_vm1 = vcmask 465920   ;;  %v997_v19 = vld [vmem:[%s2120_s17 + $0x60] sm:$0xff] }
 0x5c6   :  { %v649_v53 = vmul.f32 %v647_v13, %v1861_v16  ;;  %v650_v54 = vmul.f32 %v641_v20, %v1859_v15  ;;  %721 = vmatprep.subr.mxu0 %v652_v49  ;;  %v785_v16 = vld [vmem:[#allocation8] sm:$0xff] }
 0x5c7   :  { %722 = vmatpush1.msra.mxu0 %v651_v52  ;;  %1400 = vmatprep.subr.mxu1 %v785_v16 }
 0x5c8   :  { %723 = vmatprep.subr.mxu0 %v650_v54  ;;  %1401 = vmatpush3.msra.mxu1 %v785_v16 }
 0x5c9   :  { %724 = vmatpush1.msra.mxu0 %v649_v53 }
 0x5ca   :  { %1317 = vmatmul.mubr.msk.f32.vlgmr.msra.gmra.mxu0 %vm463_vm12, %v673_v55  ;;  %1408 = vmatprep.subr.mxu0 %v1000_v23 }
 0x5cb   :  { %763 = vmatprep.mubr.f32.mxu0 %v1685_v2  ;;  %1409 = vmatpush3.msra.mxu0 %v1000_v23 }
 0x5cc   :  { %1410 = vmatprep.subr.mxu0 %v999_v25 }
 0x5cd   :  { %1411 = vmatpush3.msra.mxu0 %v999_v25 }
 0x5ce   :  { %1318 = vmatmul.mubr.msk.f32.gmra.mxu0 %vm463_vm12, %v674_v56  ;;  %1412 = vmatprep.subr.mxu0 %v998_v18 }
 0x5cf   :  { %1413 = vmatpush3.msra.mxu0 %v998_v18 }
 0x5d0   :  { %1414 = vmatprep.subr.mxu0 %v997_v19 }
 0x5d1   :  { %v680_v15 = vpop.permute.xlu1 %679  ;;  %v685_v2 = vpop.permute.xlu0 %684  ;;  %1415 = vmatpush3.msra.mxu0 %v997_v19 }
 0x5d2   :  { %1416 = vmatprep.subr.mxu0 %v996_v24 }
 0x5d3   :  { %1417 = vmatpush3.msra.mxu0 %v996_v24 }
 0x5d4   :  { %1418 = vmatprep.subr.mxu0 %v995_v26 }
 0x5d5   :  { %1419 = vmatpush3.msra.mxu0 %v995_v26 }
 0x5d6   :  { %1420 = vmatprep.subr.mxu0 %v994_v27 }
 0x5d7   :  { %1421 = vmatpush3.msra.mxu0 %v994_v27 }
 0x5d8   :  { %1422 = vmatprep.subr.mxu0 %v993_v28 }
 0x5d9   :  { %1423 = vmatpush3.msra.mxu0 %v993_v28 }
 0x5da   :  { %1424 = vmatprep.subr.mxu0 %v992_v29 }
 0x5db   :  { %1425 = vmatpush3.msra.mxu0 %v992_v29 }
 0x5dc   :  { %1426 = vmatprep.subr.mxu0 %v991_v30 }
 0x5dd   :  { %1427 = vmatpush3.msra.mxu0 %v991_v30 }
 0x5de   :  { %1428 = vmatprep.subr.mxu0 %v990_v31 }
 0x5df   :  { %1429 = vmatpush3.msra.mxu0 %v990_v31 }
 0x5e0   :  { %1430 = vmatprep.subr.mxu0 %v989_v32 }
 0x5e1   :  { %1431 = vmatpush3.msra.mxu0 %v989_v32 }
 0x5e2   :  { %1432 = vmatprep.subr.mxu0 %v988_v33 }
 0x5e3   :  { %1433 = vmatpush3.msra.mxu0 %v988_v33 }
 0x5e4   :  { %1434 = vmatprep.subr.mxu0 %v987_v34 }
 0x5e5   :  { %1435 = vmatpush3.msra.mxu0 %v987_v34 }
 0x5e6   :  { %1436 = vmatprep.subr.mxu0 %v986_v35 }
 0x5e7   :  { %1437 = vmatpush3.msra.mxu0 %v986_v35 }
 0x5e8   :  { %1438 = vmatprep.subr.mxu0 %v985_v36 }
 0x5e9   :  { %1439 = vmatpush3.msra.mxu0 %v985_v36 }
 0x68a   :  { %v759_v59 = vpop.f32.mrf.mxu0 }
 0x68b   :  { %v760_v60 = vadd.f32 %v759_v59, %v680_v15  ;;  %v1326_v59 = vld [vmem:[#allocation10] ss:$0 sm:$0xff] }
 0x68c   :  { %v761_v61 = vpop.f32.mrf.mxu0 }
 0x68d   :  { %v762_v62 = vadd.f32 %v761_v61, %v680_v15  ;;  %774 = vrot.lane.b32.xlu1 %v760_v60, %s1687_s12  ;;  %1402 = vmatprep.mubr.msk.f32.mxu1 %vm801_vm0, %v760_v60 }
 0x68e   :  { %v765_v63 = vpop.f32.mrf.mxu0 }
 0x68f   :  { %v766_v0 = vadd.f32 %v765_v63, %v685_v2  ;;  %776 = vrot.lane.b32.xlu0 %v762_v62, %s1687_s12 }
 0x690   :  { %v767_v1 = vpop.f32.mrf.mxu0 }
 0x691   :  { %v768_v3 = vadd.f32 %v767_v1, %v685_v2  ;;  %778 = vrot.lane.b32.xlu1 %v766_v0, %s1687_s12  ;;  %1403 = vmatmul.mubr.msk.f32.vlgmr.msra.gmra.mxu1 %vm801_vm0, %v766_v0 }
 0x693   :  { %780 = vrot.lane.b32.xlu0 %v768_v3, %s1687_s12 }
 0x6ff   :  { %v775_v4 = vpop.permute.xlu1 %774 }
 0x701   :  { %v777_v5 = vpop.permute.xlu0 %776 }
 0x702   :  { %v783_v6 = vsel %vm782_vm1, %v775_v4, %v777_v5 }
 0x703   :  { %1405 = vmatprep.mubr.msk.f32.mxu1 %vm801_vm0, %v783_v6  ;;  %v779_v7 = vpop.permute.xlu1 %778 }
 0x705   :  { %v781_v8 = vpop.permute.xlu0 %780 }
 0x706   :  { %v784_v9 = vsel %vm782_vm1, %v779_v7, %v781_v8 }
 0x707   :  { %1406 = vmatmul.mubr.msk.f32.gmra.mxu1 %vm801_vm0, %v784_v9 }
 0x751   :  { %v1404_v11 = vpop.f32.mrf.mxu1 }
 0x752   :  { %v1986_v12 = vadd.f32 %v1404_v11, %v1319_v10 }
 0x753   :  { %v880_v14 = vpop.f32.mrf.mxu1 }
 0x754   :  { %v1988_v17 = vadd.f32 %v1319_v10, %v880_v14  ;;  %901 = vadd.xlane.f32.xlu0 %v1986_v12  ;;  %v912_v22 = vmul.f32 %v1986_v12, %v1986_v12 }
 0x756   :  { %899 = vadd.xlane.f32.xlu1 %v1988_v17  ;;  %v911_v21 = vmul.f32 %v1988_v17, %v1988_v17 }
 0x758   :  { %915 = vadd.xlane.f32.xlu0 %v911_v21 }
 0x75a   :  { %917 = vadd.xlane.f32.xlu1 %v912_v22 }
 0x7c7   :  { %v1407_v37 = vpop.f32.mrf.mxu1 }
 0x7c8   :  { %v2044_v38 = vadd.f32 %v1407_v37, %v1319_v10  ;;  %v1327_v37 = vld [vmem:[%s2121_s18] ss:$0 sm:$0xff] }
 0x7c9   :  { %v890_v39 = vpop.f32.mrf.mxu1 }
 0x7ca   :  { %v2046_v40 = vadd.f32 %v1319_v10, %v890_v39  ;;  %905 = vadd.xlane.f32.xlu1 %v2044_v38  ;;  %v914_v42 = vmul.f32 %v2044_v38, %v2044_v38 }
 0x7cc   :  { %903 = vadd.xlane.f32.xlu0 %v2046_v40  ;;  %v913_v44 = vmul.f32 %v2046_v40, %v2046_v40 }
 0x7ce   :  { %921 = vadd.xlane.f32.xlu1 %v914_v42 }
 0x7d0   :  { %919 = vadd.xlane.f32.xlu0 %v913_v44 }
 0x7dd   :  { %v902_v45 = vpop.xlane.xlu0 %901 }
 0x7de   :  { %v908_v41 = vmul.f32 0.029411765, %v902_v45 }
 0x7df   :  { %v900_v47 = vpop.xlane.xlu1 %899 }
 0x7e0   :  { %v907_v43 = vmul.f32 0.029411765, %v900_v47  ;;  %v928_v51 = vmul.f32 %v908_v41, %v908_v41  ;;  %v936_v58 = vsub.f32 %v1986_v12, %v908_v41  ;;  %v1194_v47 = vld [vmem:[#allocation11 + $0x78] sm:$0xff]  ;;  %v1193_v41 = vld [vmem:[#allocation11 + $0x70] sm:$0xff] }
 0x7e1   :  { %v916_v46 = vpop.xlane.xlu0 %915  ;;  %1446 = vmatprep.subr.mxu1 %v1194_v47 }
 0x7e2   :  { %v927_v48 = vmul.f32 %v907_v43, %v907_v43  ;;  %v923_v49 = vmul.f32 0.029411765, %v916_v46  ;;  %v935_v55 = vsub.f32 %v1988_v17, %v907_v43  ;;  %1447 = vmatpush3.msra.mxu1 %v1194_v47  ;;  %v1192_v43 = vld [vmem:[#allocation11 + $0x68] sm:$0xff]  ;;  %v1191_v46 = vld [vmem:[#allocation11 + $0x60] sm:$0xff] }
 0x7e3   :  { %v918_v50 = vpop.xlane.xlu1 %917  ;;  %1448 = vmatprep.subr.mxu1 %v1193_v41 }
 0x7e4   :  { %v931_v52 = vsub.f32 %v923_v49, %v927_v48  ;;  %v924_v13 = vmul.f32 0.029411765, %v918_v50  ;;  %1449 = vmatpush3.msra.mxu1 %v1193_v41  ;;  %v1190_v48 = vld [vmem:[#allocation11 + $0x58] sm:$0xff]  ;;  %v1189_v49 = vld [vmem:[#allocation11 + $0x50] sm:$0xff]  ;;  %v1188_v50 = vld [vmem:[#allocation11 + $0x48] sm:$0xff] }
 0x7e5   :  { %1450 = vmatprep.subr.mxu1 %v1192_v43 }
 0x7e6   :  { %v939_v20 = vadd.f32 1e-05, %v931_v52  ;;  %v932_v53 = vsub.f32 %v924_v13, %v928_v51  ;;  %1451 = vmatpush3.msra.mxu1 %v1192_v43  ;;  %v1187_v51 = vld [vmem:[#allocation11 + $0x40] sm:$0xff]  ;;  %v1186_v52 = vld [vmem:[#allocation11 + $0x38] sm:$0xff]  ;;  %v1185_v13 = vld [vmem:[#allocation11 + $0x30] sm:$0xff] }
 0x7e7   :  { %1452 = vmatprep.subr.mxu1 %v1191_v46 }
 0x7e8   :  { %1509 = vrsqrt.f32 %v939_v20  ;;  %v940_v54 = vadd.f32 1e-05, %v932_v53  ;;  %1453 = vmatpush3.msra.mxu1 %v1191_v46  ;;  %v1184_v20 = vld [vmem:[#allocation11 + $0x28] sm:$0xff]  ;;  %v1183_v53 = vld [vmem:[#allocation11 + $0x20] sm:$0xff] }
 0x7e9   :  { %1454 = vmatprep.subr.mxu1 %v1190_v48 }
 0x7ea   :  { %1511 = vrsqrt.f32 %v940_v54  ;;  %1455 = vmatpush3.msra.mxu1 %v1190_v48  ;;  %v1182_v54 = vld [vmem:[#allocation11 + $0x18] sm:$0xff] }
 0x7eb   :  { %1456 = vmatprep.subr.mxu1 %v1189_v49 }
 0x7ec   :  { %1457 = vmatpush3.msra.mxu1 %v1189_v49 }
 0x7ed   :  { %1458 = vmatprep.subr.mxu1 %v1188_v50 }
 0x7ee   :  { %1459 = vmatpush3.msra.mxu1 %v1188_v50 }
 0x7ef   :  { %1460 = vmatprep.subr.mxu1 %v1187_v51 }
 0x7f0   :  { %1461 = vmatpush3.msra.mxu1 %v1187_v51 }
 0x7f1   :  { %1462 = vmatprep.subr.mxu1 %v1186_v52 }
 0x7f2   :  { %1463 = vmatpush3.msra.mxu1 %v1186_v52 }
 0x7f3   :  { %1464 = vmatprep.subr.mxu1 %v1185_v13 }
 0x7f4   :  { %1465 = vmatpush3.msra.mxu1 %v1185_v13 }
 0x7f5   :  { %v1510_v56 = vpop.eup %1509  ;;  %1466 = vmatprep.subr.mxu1 %v1184_v20 }
 0x7f6   :  { %v947_v16 = vmul.f32 %v1510_v56, %v935_v55  ;;  %1467 = vmatpush3.msra.mxu1 %v1184_v20  ;;  %v1181_v55 = vld [vmem:[#allocation11 + $0x10] sm:$0xff]  ;;  %v1180_v56 = vld [vmem:[#allocation11 + $0x8] sm:$0xff] }
 0x7f7   :  { %v1512_v15 = vpop.eup %1511  ;;  %1468 = vmatprep.subr.mxu1 %v1183_v53 }
 0x7f8   :  { %v958_v60 = vmul.f32 %v1325_v57, %v947_v16  ;;  %v948_v61 = vmul.f32 %v1512_v15, %v936_v58  ;;  %1469 = vmatpush3.msra.mxu1 %v1183_v53 }
 0x7f9   :  { %1470 = vmatprep.subr.mxu1 %v1182_v54 }
 0x7fa   :  { %v969_v62 = vadd.f32 %v1326_v59, %v958_v60  ;;  %v959_v2 = vmul.f32 %v1325_v57, %v948_v61  ;;  %1471 = vmatpush3.msra.mxu1 %v1182_v54 }
 0x7fb   :  { %1472 = vmatprep.subr.mxu1 %v1181_v55 }
 0x7fc   :  { %vm973_vm2 = vcmp.ge.f32.partialorder %v969_v62, 0.0  ;;  %v977_v63 = vmul.f32 0.3, %v969_v62  ;;  %v970_v0 = vadd.f32 %v1326_v59, %v959_v2  ;;  %1473 = vmatpush3.msra.mxu1 %v1181_v55 }
 0x7fd   :  { %1474 = vmatprep.subr.mxu1 %v1180_v56 }
 0x7fe   :  { %v981_v1 = vsel %vm973_vm2, %v969_v62, %v977_v63  ;;  %vm974_vm5 = vcmp.ge.f32.partialorder %v970_v0, 0.0  ;;  %v978_v3 = vmul.f32 0.3, %v970_v0  ;;  %1475 = vmatpush3.msra.mxu1 %v1180_v56 }
 0x7ff   :  { %1440 = vmatprep.mubr.f32.mxu0 %v981_v1 }
 0x800   :  { %v982_v4 = vsel %vm974_vm5, %v970_v0, %v978_v3 }
 0x801   :  { %1441 = vmatmul.mubr.f32.vlgmr.msra.gmra.mxu0 %v982_v4 }
 0x853   :  { %v906_v5 = vpop.xlane.xlu1 %905 }
 0x854   :  { %v910_v6 = vmul.f32 0.029411765, %v906_v5 }
 0x855   :  { %v904_v7 = vpop.xlane.xlu0 %903 }
 0x856   :  { %v909_v8 = vmul.f32 0.029411765, %v904_v7  ;;  %v930_v10 = vmul.f32 %v910_v6, %v910_v6  ;;  %v938_v18 = vsub.f32 %v2044_v38, %v910_v6 }
 0x857   :  { %v922_v9 = vpop.xlane.xlu1 %921 }
 0x858   :  { %v926_v11 = vmul.f32 0.029411765, %v922_v9  ;;  %v929_v14 = vmul.f32 %v909_v8, %v909_v8  ;;  %v937_v24 = vsub.f32 %v2046_v40, %v909_v8 }
 0x859   :  { %v920_v12 = vpop.xlane.xlu0 %919 }
 0x85a   :  { %v934_v17 = vsub.f32 %v926_v11, %v930_v10  ;;  %v925_v21 = vmul.f32 0.029411765, %v920_v12 }
 0x85c   :  { %v942_v22 = vadd.f32 1e-05, %v934_v17  ;;  %v933_v23 = vsub.f32 %v925_v21, %v929_v14  ;;  %v1328_v17 = vld [vmem:[%s2122_s19] ss:$0 sm:$0xff] }
 0x85e   :  { %1513 = vrsqrt.f32 %v942_v22  ;;  %v941_v25 = vadd.f32 1e-05, %v933_v23 }
 0x860   :  { %1515 = vrsqrt.f32 %v941_v25  ;;  %v1329_v25 = vld [vmem:[%s2123_s20] ss:$0 sm:$0xff] }
 0x86b   :  { %v1514_v19 = vpop.eup %1513 }
 0x86c   :  { %v950_v26 = vmul.f32 %v1514_v19, %v938_v18 }
 0x86d   :  { %v1516_v27 = vpop.eup %1515 }
 0x86e   :  { %v949_v28 = vmul.f32 %v1516_v27, %v937_v24  ;;  %v961_v29 = vmul.f32 %v1325_v57, %v950_v26 }
 0x870   :  { %v960_v30 = vmul.f32 %v1325_v57, %v949_v28  ;;  %v972_v31 = vadd.f32 %v1326_v59, %v961_v29  ;;  %v1179_v57 = vld [vmem:[#allocation11] sm:$0xff] }
 0x871   :  { %1476 = vmatprep.subr.mxu1 %v1179_v57 }
 0x872   :  { %v971_v32 = vadd.f32 %v1326_v59, %v960_v30  ;;  %v980_v33 = vmul.f32 0.3, %v972_v31  ;;  %vm976_vm7 = vcmp.ge.f32.partialorder %v972_v31, 0.0  ;;  %1477 = vmatpush3.msra.mxu1 %v1179_v57 }
 0x874   :  { %vm975_vm6 = vcmp.ge.f32.partialorder %v971_v32, 0.0  ;;  %v979_v34 = vmul.f32 0.3, %v971_v32  ;;  %v984_v36 = vsel %vm976_vm7, %v972_v31, %v980_v33 }
 0x876   :  { %v983_v35 = vsel %vm975_vm6, %v971_v32, %v979_v34 }
 0x877   :  { %1443 = vmatprep.mubr.f32.mxu0 %v983_v35 }
 0x878   :  { %1444 = vmatmul.mubr.f32.gmra.mxu0 %v984_v36 }
 0x8c1   :  { %v1442_v38 = vpop.f32.mrf.mxu0 }
 0x8c2   :  { %v2064_v39 = vadd.f32 %v1442_v38, %v1327_v37 }
 0x8c3   :  { %v1074_v40 = vpop.f32.mrf.mxu0 }
 0x8c4   :  { %v2066_v42 = vadd.f32 %v1327_v37, %v1074_v40  ;;  %1095 = vadd.xlane.f32.xlu1 %v2064_v39  ;;  %v1106_v44 = vmul.f32 %v2064_v39, %v2064_v39 }
 0x8c6   :  { %1093 = vadd.xlane.f32.xlu0 %v2066_v42  ;;  %v1105_v45 = vmul.f32 %v2066_v42, %v2066_v42 }
 0x8c8   :  { %1111 = vadd.xlane.f32.xlu1 %v1106_v44 }
 0x8ca   :  { %1109 = vadd.xlane.f32.xlu0 %v1105_v45 }
 0x938   :  { %v1445_v58 = vpop.f32.mrf.mxu0 }
 0x939   :  { %v2074_v16 = vadd.f32 %v1445_v58, %v1327_v37  ;;  %v1330_v58 = vld [vmem:[%s2125_s22] ss:$0 sm:$0xff] }
 0x93a   :  { %v1084_v15 = vpop.f32.mrf.mxu0 }
 0x93b   :  { %v2076_v59 = vadd.f32 %v1327_v37, %v1084_v15  ;;  %1099 = vadd.xlane.f32.xlu1 %v2074_v16  ;;  %v1108_v60 = vmul.f32 %v2074_v16, %v2074_v16 }
 0x93d   :  { %1097 = vadd.xlane.f32.xlu0 %v2076_v59  ;;  %v1107_v61 = vmul.f32 %v2076_v59, %v2076_v59 }
 0x93f   :  { %1115 = vadd.xlane.f32.xlu1 %v1108_v60 }
 0x941   :  { %1113 = vadd.xlane.f32.xlu0 %v1107_v61 }
 0x94d   :  { %v1096_v62 = vpop.xlane.xlu1 %1095 }
 0x94e   :  { %v1102_v2 = vmul.f32 0.029411765, %v1096_v62 }
 0x94f   :  { %v1094_v63 = vpop.xlane.xlu0 %1093 }
 0x950   :  { %v1101_v0 = vmul.f32 0.029411765, %v1094_v63  ;;  %v1122_v3 = vmul.f32 %v1102_v2, %v1102_v2  ;;  %v1130_v12 = vsub.f32 %v2064_v39, %v1102_v2 }
 0x951   :  { %v1112_v1 = vpop.xlane.xlu1 %1111 }
 0x952   :  { %v1118_v4 = vmul.f32 0.029411765, %v1112_v1  ;;  %v1121_v6 = vmul.f32 %v1101_v0, %v1101_v0  ;;  %v1129_v21 = vsub.f32 %v2066_v42, %v1101_v0 }
 0x953   :  { %v1110_v5 = vpop.xlane.xlu0 %1109 }
 0x954   :  { %v1126_v7 = vsub.f32 %v1118_v4, %v1122_v3  ;;  %v1117_v8 = vmul.f32 0.029411765, %v1110_v5 }
 0x956   :  { %v1134_v9 = vadd.f32 1e-05, %v1126_v7  ;;  %v1125_v10 = vsub.f32 %v1117_v8, %v1121_v6 }
 0x958   :  { %1517 = vrsqrt.f32 %v1134_v9  ;;  %v1133_v11 = vadd.f32 1e-05, %v1125_v10 }
 0x95a   :  { %1519 = vrsqrt.f32 %v1133_v11 }
 0x965   :  { %v1518_v14 = vpop.eup %1517 }
 0x966   :  { %v1142_v22 = vmul.f32 %v1518_v14, %v1130_v12 }
 0x967   :  { %v1520_v23 = vpop.eup %1519 }
 0x968   :  { %v1141_v18 = vmul.f32 %v1520_v23, %v1129_v21  ;;  %v1153_v19 = vmul.f32 %v1328_v17, %v1142_v22 }
 0x96a   :  { %v1152_v24 = vmul.f32 %v1328_v17, %v1141_v18  ;;  %v1164_v26 = vadd.f32 %v1329_v25, %v1153_v19 }
 0x96c   :  { %v1163_v27 = vadd.f32 %v1329_v25, %v1152_v24  ;;  %v1172_v28 = vmul.f32 0.3, %v1164_v26  ;;  %vm1168_vm9 = vcmp.ge.f32.partialorder %v1164_v26, 0.0 }
 0x96e   :  { %vm1167_vm8 = vcmp.ge.f32.partialorder %v1163_v27, 0.0  ;;  %v1171_v29 = vmul.f32 0.3, %v1163_v27  ;;  %v1176_v31 = vsel %vm1168_vm9, %v1164_v26, %v1172_v28 }
 0x970   :  { %v1175_v30 = vsel %vm1167_vm8, %v1163_v27, %v1171_v29 }
 0x971   :  { %1478 = vmatprep.mubr.f32.mxu1 %v1175_v30 }
 0x972   :  { %1479 = vmatmul.mubr.f32.vlgmr.msra.gmra.mxu1 %v1176_v31 }
 0x9c4   :  { %v1100_v32 = vpop.xlane.xlu1 %1099 }
 0x9c5   :  { %v1104_v33 = vmul.f32 0.029411765, %v1100_v32 }
 0x9c6   :  { %v1098_v34 = vpop.xlane.xlu0 %1097 }
 0x9c7   :  { %v1103_v35 = vmul.f32 0.029411765, %v1098_v34  ;;  %v1124_v37 = vmul.f32 %v1104_v33, %v1104_v33  ;;  %v1132_v43 = vsub.f32 %v2074_v16, %v1104_v33 }
 0x9c8   :  { %v1116_v36 = vpop.xlane.xlu1 %1115 }
 0x9c9   :  { %v1120_v38 = vmul.f32 0.029411765, %v1116_v36  ;;  %v1123_v40 = vmul.f32 %v1103_v35, %v1103_v35  ;;  %v1131_v48 = vsub.f32 %v2076_v59, %v1103_v35 }
 0x9ca   :  { %v1114_v39 = vpop.xlane.xlu0 %1113 }
 0x9cb   :  { %v1128_v42 = vsub.f32 %v1120_v38, %v1124_v37  ;;  %v1119_v44 = vmul.f32 0.029411765, %v1114_v39 }
 0x9cd   :  { %v1136_v45 = vadd.f32 1e-05, %v1128_v42  ;;  %v1127_v47 = vsub.f32 %v1119_v44, %v1123_v40 }
 0x9cf   :  { %1521 = vrsqrt.f32 %v1136_v45  ;;  %v1135_v41 = vadd.f32 1e-05, %v1127_v47 }
 0x9d1   :  { %1523 = vrsqrt.f32 %v1135_v41 }
 0x9dc   :  { %v1522_v46 = vpop.eup %1521 }
 0x9dd   :  { %v1144_v49 = vmul.f32 %v1522_v46, %v1132_v43 }
 0x9de   :  { %v1524_v50 = vpop.eup %1523 }
 0x9df   :  { %v1143_v51 = vmul.f32 %v1524_v50, %v1131_v48  ;;  %v1155_v52 = vmul.f32 %v1328_v17, %v1144_v49 }
 0x9e1   :  { %v1154_v13 = vmul.f32 %v1328_v17, %v1143_v51  ;;  %v1166_v20 = vadd.f32 %v1329_v25, %v1155_v52 }
 0x9e3   :  { %v1165_v53 = vadd.f32 %v1329_v25, %v1154_v13  ;;  %v1174_v54 = vmul.f32 0.3, %v1166_v20  ;;  %vm1170_vm11 = vcmp.ge.f32.partialorder %v1166_v20, 0.0 }
 0x9e5   :  { %vm1169_vm10 = vcmp.ge.f32.partialorder %v1165_v53, 0.0  ;;  %v1173_v55 = vmul.f32 0.3, %v1165_v53  ;;  %v1178_v57 = vsel %vm1170_vm11, %v1166_v20, %v1174_v54 }
 0x9e7   :  { %v1177_v56 = vsel %vm1169_vm10, %v1165_v53, %v1173_v55 }
 0x9e8   :  { %1481 = vmatprep.mubr.f32.mxu1 %v1177_v56 }
 0x9e9   :  { %1482 = vmatmul.mubr.f32.gmra.mxu1 %v1178_v57 }
 0xa32   :  { %v1480_v16 = vpop.f32.mrf.mxu1 }
 0xa33   :  { %v1274_v15 = vadd.f32 %v1480_v16, %v1330_v58 }
 0xa34   :  { %v1268_v59 = vpop.f32.mrf.mxu1 }
 0xa35   :  { %1288 = vst [vmem:[#allocation13 + $0x8] sm:$0xff] %v1274_v15  ;;  %v1269_v60 = vadd.f32 %v1330_v58, %v1268_v59 }
 0xa37   :  { %1287 = vst [vmem:[#allocation13] sm:$0xff] %v1269_v60 }
 0xaa9   :  { %v1483_v61 = vpop.f32.mrf.mxu1 }
 0xaaa   :  { %v1284_v62 = vadd.f32 %v1483_v61, %v1330_v58 }
 0xaab   :  { %v1278_v2 = vpop.f32.mrf.mxu1 }
 0xaac   :  { %1290 = vst [vmem:[#allocation13 + $0x18] sm:$0xff] %v1284_v62  ;;  %v1279_v63 = vadd.f32 %v1330_v58, %v1278_v2 }
 0xaae   :  { %1289 = vst [vmem:[#allocation13 + $0x10] sm:$0xff] %v1279_v63 }
 0xaaf   :  { %1656 = shalt.err (!%p1653_p6)
}
 0xab0   :  { %1302 = dma.vmem_to_hbm [thread:$0]  %s1297_s10, 512, %s2126_s23, [#allocation4], %s1676_s25, %s1676_s25, %s1677_s5  }
 0xab1   :  { %1673 = dma.done.wait [#allocation4], 512  }
 0xab2   :  { %1674 = vsyncadd [#allocation4], 4294966784 }
 0xab3   :  { %1306 = vsyncpa [#allocation3], 1 }
 0xab4   :  { %1307 = vsyncpa [#allocation6], 1 }
 0xab5   :  { %1308 = vsyncpa [#allocation9], 1 }
 0xab6   :  { %1309 = vsyncpa [#allocation12], 1 }
 0xab7   :  { %1310 = vsyncpa [#allocation4], 1 }

</bundles_post_ra>
